<compile_context>
chip_gen: v5e
topology: v5e:2x2
jax: 0.10.0
libtpu: 0.0.40
codegen_flags: <defaults>
</compile_context>

<pallas_src>
import jax
import jax.numpy as jnp
from jax.experimental import pallas as pl
from jax.experimental.pallas import tpu as pltpu

EPS = 1e-6  # LaplaceNLLLoss eps


def _mdn_loss_kernel(musig_ref, y_ref, pi_ref, loss_ref, best_ref):
    N, K, four_t = musig_ref.shape
    TT = four_t // 2          # 2 * pred_length (x block then y block)
    T = TT // 2               # pred_length

    musig = musig_ref[...]    # (N, K, 4T): [mu_x(T) | mu_y(T) | sg_x(T) | sg_y(T)]
    y = y_ref[...]            # (N, 2T):    [y_x(T)  | y_y(T)]
    pi = pi_ref[...]          # (N, K)

    # ----- per-mode distances ------------------------------------------------
    d = musig[:, :, :TT] - y[:, None, :]            # (N, K, 2T)
    sq = d * d
    dist = jnp.sqrt(sq[:, :, :T] + sq[:, :, T:])    # (N, K, T) per-step L2

    l2 = jnp.sum(dist, axis=-1)                     # (N, K)  ADE-style l2_norm
    t_iota = jax.lax.broadcasted_iota(jnp.int32, (N, K, T), 2)
    fde = jnp.sum(jnp.where(t_iota == T - 1, dist, 0.0), axis=-1)   # (N, K)

    # ----- argmin over modes (first-index tie-break, like torch.argmin) ------
    kio = jax.lax.broadcasted_iota(jnp.int32, (N, K), 1)
    amin_ade = jnp.min(
        jnp.where(l2 <= jnp.min(l2, axis=1, keepdims=True), kio, K),
        axis=1, keepdims=True)                      # (N, 1) int32
    amin_fde = jnp.min(
        jnp.where(fde <= jnp.min(fde, axis=1, keepdims=True), kio, K),
        axis=1, keepdims=True)                      # (N, 1) int32
    best_ref[:, 0:1] = amin_ade                     # packed (N, 2) output
    best_ref[:, 1:2] = amin_fde

    # ----- single fused one-hot gather of the best mode from the packed slab -
    onehot = jnp.where(kio == amin_ade, 1.0, 0.0)               # (N, K)
    best_pack = jnp.sum(onehot[:, :, None] * musig, axis=1)     # (N, 4T)

    # ----- LaplaceNLLLoss(reduction='mean') -----------------------------------
    mu_b = best_pack[:, :TT]                                    # (N, 2T)
    sg_b = jnp.maximum(best_pack[:, TT:], EPS)                  # (N, 2T)
    inv_sg = pl.reciprocal(sg_b, approx=False)                  # exact recip
    nll = jnp.log(2.0 * sg_b) + jnp.abs(y - mu_b) * inv_sg      # (N, 2T)
    reg = jnp.sum(jnp.sum(nll, axis=1, keepdims=True),
                  axis=0, keepdims=True) * (1.0 / (N * TT))     # (1, 1)

    # ----- SoftTargetCrossEntropyLoss(reduction='mean') on out_pi -------------
    # soft_target = softmax(-l2 / pred_length) over modes
    logits = l2 * (-1.0 / T)                                    # (N, K)
    e = jnp.exp(logits - jnp.max(logits, axis=1, keepdims=True))
    soft_t = e * pl.reciprocal(jnp.sum(e, axis=1, keepdims=True), approx=False)

    pmax = jnp.max(pi, axis=1, keepdims=True)
    lse = jnp.log(jnp.sum(jnp.exp(pi - pmax), axis=1, keepdims=True))
    lsp = pi - pmax - lse                                       # log_softmax(pi)

    ce = jnp.sum(jnp.sum(soft_t * lsp, axis=1, keepdims=True),
                 axis=0, keepdims=True) * (-1.0 / N)            # (1, 1)

    loss_ref[...] = reg + ce


@jax.jit
def mdn_loss_pallas(y, out_mu, out_sigma, out_pi, pre_obs):
    """Mirrors PMIra.mdn_loss.

    y:         (pred_length, N, 2)   -- train_y_0.permute(2, 0, 1)
    out_mu:    (K, N, pred_length, 2)
    out_sigma: (K, N, pred_length, 2)
    out_pi:    (N, K)
    pre_obs:   (obs_length - 1, N, 2)
    Returns (loss, full_pre_tra) like the PyTorch module.
    """
    T, N, _ = y.shape
    K = out_mu.shape[0]

    # Packed slabs (review item 1): one (N, K, 4T) mu/sigma slab, one (N, 2T)
    # target slab.  This is a single fused repack of ~6 KiB, replacing the
    # previous 3 transposes + 6 per-coordinate strided slices.
    cat = jnp.concatenate([out_mu, out_sigma], axis=-1)            # (K, N, T, 4)
    musig = jnp.transpose(cat, (1, 0, 3, 2)).reshape(N, K, 4 * T)  # (N, K, 4T)
    y_cm = jnp.transpose(y, (1, 2, 0)).reshape(N, 2 * T)           # (N, 2T)

    vmem = pl.BlockSpec(memory_space=pltpu.MemorySpace.VMEM)
    loss, best = pl.pallas_call(
        _mdn_loss_kernel,
        out_shape=(jax.ShapeDtypeStruct((1, 1), jnp.float32),
                   jax.ShapeDtypeStruct((N, 2), jnp.int32)),
        in_specs=[vmem, vmem, vmem],
        out_specs=(vmem, vmem),
    )(musig, y_cm, out_pi)

    best_ade = best[:, 0]
    best_fde = best[:, 1]
    # glue: sample_k gathers + concat with pre_obs (full_pre_tra list)
    sample_ade = jnp.transpose(out_mu[best_ade, jnp.arange(N)], (1, 0, 2))
    sample_fde = jnp.transpose(out_mu[best_fde, jnp.arange(N)], (1, 0, 2))
    full_pre_tra = [jnp.concatenate([pre_obs, sample_ade], axis=0),
                    jnp.concatenate([pre_obs, sample_fde], axis=0)]
    return loss[0, 0], full_pre_tra


def mdn_loss_ref(y, out_mu, out_sigma, out_pi, pred_length, eps=EPS):
    """Pure-JAX reference replicating the PyTorch mdn_loss numerics."""
    T, N, _ = y.shape
    y_nt = jnp.transpose(y, (1, 0, 2))                              # (N, T, 2)
    l2 = jnp.linalg.norm(out_mu - y_nt[None], axis=-1).sum(-1)      # (K, N)
    best = jnp.argmin(l2, axis=0)
    y_hat = jnp.concatenate([out_mu, out_sigma], axis=-1)
    y_hat_best = y_hat[best, jnp.arange(N)]                         # (N, T, 4)
    loc = y_hat_best[..., :2]
    scale = jnp.maximum(y_hat_best[..., 2:], eps)
    reg = (jnp.log(2.0 * scale) + jnp.abs(y_nt - loc) / scale).mean()
    soft_t = jax.nn.softmax(-l2 / pred_length, axis=0).T            # (N, K)
    ce = jnp.sum(-soft_t * jax.nn.log_softmax(out_pi, axis=-1), axis=-1).mean()
    return reg + ce


if __name__ == "__main__":
    key = jax.random.PRNGKey(0)
    obs_length, pred_length = 8, 12   # args.obs_length / args.pred_length
    N, K = 8, 4                       # agents in batch / mixture modes

    k1, k2, k3, k4, k5 = jax.random.split(key, 5)
    out_mu = jax.random.normal(k1, (K, N, pred_length, 2), jnp.float32)
    out_sigma = 0.5 + 0.1 * jnp.abs(
        jax.random.normal(k2, (K, N, pred_length, 2), jnp.float32))
    out_pi = jax.random.normal(k3, (N, K), jnp.float32)
    y = jax.random.normal(k4, (pred_length, N, 2), jnp.float32)
    pre_obs = jax.random.normal(k5, (obs_length - 1, N, 2), jnp.float32)

    loss, full_pre_tra = mdn_loss_pallas(y, out_mu, out_sigma, out_pi, pre_obs)
    jax.block_until_ready(loss)
    for t in full_pre_tra:
        jax.block_until_ready(t)

    ref = mdn_loss_ref(y, out_mu, out_sigma, out_pi, pred_length)
    assert jnp.allclose(loss, ref, atol=1e-4, rtol=1e-4), (loss, ref)
    assert full_pre_tra[0].shape == (obs_length - 1 + pred_length, N, 2)
    assert full_pre_tra[1].shape == (obs_length - 1 + pred_length, N, 2)
    print("KERNEL_OK")
</pallas_src>

<mosaic_0001>
module attributes {stable_mosaic.version = 11 : i64} {
  func.func @_mdn_loss_kernel(%arg0: memref<8x4x48xf32, #tpu.memory_space<vmem>>, %arg1: memref<8x24xf32, #tpu.memory_space<vmem>>, %arg2: memref<8x4xf32, #tpu.memory_space<vmem>>, %arg3: memref<1x1xf32, #tpu.memory_space<vmem>>, %arg4: memref<8x2xi32, #tpu.memory_space<vmem>>) attributes {dimension_semantics = [], scalar_prefetch = 0 : i64, scratch_operands = 0 : i64, tpu.core_type = #tpu.core_type<tc>} {
    %c0 = arith.constant 0 : index
    %c0_0 = arith.constant 0 : index
    %c0_1 = arith.constant 0 : index
    %0 = vector.load %arg0[%c0, %c0_0, %c0_1] : memref<8x4x48xf32, #tpu.memory_space<vmem>>, vector<8x4x48xf32>
    %c0_2 = arith.constant 0 : index
    %c0_3 = arith.constant 0 : index
    %1 = vector.load %arg1[%c0_2, %c0_3] : memref<8x24xf32, #tpu.memory_space<vmem>>, vector<8x24xf32>
    %c0_4 = arith.constant 0 : index
    %c0_5 = arith.constant 0 : index
    %2 = vector.load %arg2[%c0_4, %c0_5] : memref<8x4xf32, #tpu.memory_space<vmem>>, vector<8x4xf32>
    %3 = vector.extract_strided_slice %0 {offsets = [0, 0, 0], sizes = [8, 4, 24], strides = [1, 1, 1]} : vector<8x4x48xf32> to vector<8x4x24xf32>
    %4 = vector.shape_cast %1 : vector<8x24xf32> to vector<8x1x24xf32>
    %5 = vector.broadcast %4 : vector<8x1x24xf32> to vector<8x4x24xf32>
    %6 = arith.subf %3, %5 : vector<8x4x24xf32>
    %7 = arith.mulf %6, %6 : vector<8x4x24xf32>
    %8 = vector.extract_strided_slice %7 {offsets = [0, 0, 0], sizes = [8, 4, 12], strides = [1, 1, 1]} : vector<8x4x24xf32> to vector<8x4x12xf32>
    %9 = vector.extract_strided_slice %7 {offsets = [0, 0, 12], sizes = [8, 4, 12], strides = [1, 1, 1]} : vector<8x4x24xf32> to vector<8x4x12xf32>
    %10 = arith.addf %8, %9 : vector<8x4x12xf32>
    %11 = math.sqrt %10 : vector<8x4x12xf32>
    %cst = arith.constant dense<0.000000e+00> : vector<8x4xf32>
    %12 = vector.multi_reduction <add>, %11, %cst [2] : vector<8x4x12xf32> to vector<8x4xf32>
    %13 = tpu.iota {dimensions = array<i32: 2>} : vector<8x4x12xi32>
    %c11_i32 = arith.constant 11 : i32
    %14 = vector.broadcast %c11_i32 : i32 to vector<8x4x12xi32>
    %15 = arith.cmpi eq, %13, %14 : vector<8x4x12xi32>
    %cst_6 = arith.constant 0.000000e+00 : f32
    %16 = vector.broadcast %cst_6 : f32 to vector<8x4x12xf32>
    %17 = arith.select %15, %11, %16 : vector<8x4x12xi1>, vector<8x4x12xf32>
    %cst_7 = arith.constant dense<0.000000e+00> : vector<8x4xf32>
    %18 = vector.multi_reduction <add>, %17, %cst_7 [2] : vector<8x4x12xf32> to vector<8x4xf32>
    %19 = tpu.iota {dimensions = array<i32: 1>} : vector<8x4xi32>
    %cst_8 = arith.constant dense<0x7F800000> : vector<8xf32>
    %20 = vector.multi_reduction <minimumf>, %12, %cst_8 [1] : vector<8x4xf32> to vector<8xf32>
    %21 = vector.shape_cast %20 : vector<8xf32> to vector<8x1xf32>
    %22 = vector.broadcast %21 : vector<8x1xf32> to vector<8x4xf32>
    %23 = arith.cmpf ole, %12, %22 : vector<8x4xf32>
    %c4_i32 = arith.constant 4 : i32
    %24 = vector.broadcast %c4_i32 : i32 to vector<8x4xi32>
    %25 = arith.select %23, %19, %24 : vector<8x4xi1>, vector<8x4xi32>
    %cst_9 = arith.constant dense<2147483647> : vector<8xi32>
    %26 = vector.multi_reduction <minsi>, %25, %cst_9 [1] : vector<8x4xi32> to vector<8xi32>
    %27 = vector.shape_cast %26 : vector<8xi32> to vector<8x1xi32>
    %cst_10 = arith.constant dense<0x7F800000> : vector<8xf32>
    %28 = vector.multi_reduction <minimumf>, %18, %cst_10 [1] : vector<8x4xf32> to vector<8xf32>
    %29 = vector.shape_cast %28 : vector<8xf32> to vector<8x1xf32>
    %30 = vector.broadcast %29 : vector<8x1xf32> to vector<8x4xf32>
    %31 = arith.cmpf ole, %18, %30 : vector<8x4xf32>
    %c4_i32_11 = arith.constant 4 : i32
    %32 = vector.broadcast %c4_i32_11 : i32 to vector<8x4xi32>
    %33 = arith.select %31, %19, %32 : vector<8x4xi1>, vector<8x4xi32>
    %cst_12 = arith.constant dense<2147483647> : vector<8xi32>
    %34 = vector.multi_reduction <minsi>, %33, %cst_12 [1] : vector<8x4xi32> to vector<8xi32>
    %35 = vector.shape_cast %34 : vector<8xi32> to vector<8x1xi32>
    %c0_13 = arith.constant 0 : index
    %c0_14 = arith.constant 0 : index
    %36 = vector.load %arg4[%c0_13, %c0_14] : memref<8x2xi32, #tpu.memory_space<vmem>>, vector<8x1xi32>
    tpu.vector_store %arg4[%c0_13, %c0_14], %27 {strides = array<i32>} : memref<8x2xi32, #tpu.memory_space<vmem>>, vector<8x1xi32>,
    %c0_15 = arith.constant 0 : index
    %c1 = arith.constant 1 : index
    %37 = vector.load %arg4[%c0_15, %c1] : memref<8x2xi32, #tpu.memory_space<vmem>>, vector<8x1xi32>
    tpu.vector_store %arg4[%c0_15, %c1], %35 {strides = array<i32>} : memref<8x2xi32, #tpu.memory_space<vmem>>, vector<8x1xi32>,
    %38 = vector.broadcast %27 : vector<8x1xi32> to vector<8x4xi32>
    %39 = arith.cmpi eq, %19, %38 : vector<8x4xi32>
    %cst_16 = arith.constant 1.000000e+00 : f32
    %cst_17 = arith.constant 0.000000e+00 : f32
    %40 = vector.broadcast %cst_16 : f32 to vector<8x4xf32>
    %41 = vector.broadcast %cst_17 : f32 to vector<8x4xf32>
    %42 = arith.select %39, %40, %41 : vector<8x4xi1>, vector<8x4xf32>
    %43 = vector.shape_cast %42 : vector<8x4xf32> to vector<8x4x1xf32>
    %44 = vector.broadcast %43 : vector<8x4x1xf32> to vector<8x4x48xf32>
    %45 = arith.mulf %44, %0 : vector<8x4x48xf32>
    %cst_18 = arith.constant dense<0.000000e+00> : vector<8x48xf32>
    %46 = vector.multi_reduction <add>, %45, %cst_18 [1] : vector<8x4x48xf32> to vector<8x48xf32>
    %47 = vector.extract_strided_slice %46 {offsets = [0, 0], sizes = [8, 24], strides = [1, 1]} : vector<8x48xf32> to vector<8x24xf32>
    %48 = vector.extract_strided_slice %46 {offsets = [0, 24], sizes = [8, 24], strides = [1, 1]} : vector<8x48xf32> to vector<8x24xf32>
    %cst_19 = arith.constant 9.99999997E-7 : f32
    %49 = vector.broadcast %cst_19 : f32 to vector<8x24xf32>
    %50 = arith.maximumf %48, %49 : vector<8x24xf32>
    %51 = tpu.reciprocal %50 : vector<8x24xf32> -> vector<8x24xf32>
    %cst_20 = arith.constant 2.000000e+00 : f32
    %52 = vector.broadcast %cst_20 : f32 to vector<8x24xf32>
    %53 = arith.mulf %52, %50 : vector<8x24xf32>
    %54 = math.log %53 : vector<8x24xf32>
    %55 = arith.subf %1, %47 : vector<8x24xf32>
    %56 = math.absf %55 : vector<8x24xf32>
    %57 = arith.mulf %56, %51 : vector<8x24xf32>
    %58 = arith.addf %54, %57 : vector<8x24xf32>
    %cst_21 = arith.constant dense<0.000000e+00> : vector<8xf32>
    %59 = vector.multi_reduction <add>, %58, %cst_21 [1] : vector<8x24xf32> to vector<8xf32>
    %60 = vector.shape_cast %59 : vector<8xf32> to vector<8x1xf32>
    %cst_22 = arith.constant dense<0.000000e+00> : vector<1xf32>
    %61 = vector.multi_reduction <add>, %60, %cst_22 [0] : vector<8x1xf32> to vector<1xf32>
    %62 = vector.shape_cast %61 : vector<1xf32> to vector<1x1xf32>
    %cst_23 = arith.constant 0.00520833349 : f32
    %63 = vector.broadcast %cst_23 : f32 to vector<1x1xf32>
    %64 = arith.mulf %62, %63 : vector<1x1xf32>
    %cst_24 = arith.constant -0.0833333358 : f32
    %65 = vector.broadcast %cst_24 : f32 to vector<8x4xf32>
    %66 = arith.mulf %12, %65 : vector<8x4xf32>
    %cst_25 = arith.constant dense<0xFF800000> : vector<8xf32>
    %67 = vector.multi_reduction <maximumf>, %66, %cst_25 [1] : vector<8x4xf32> to vector<8xf32>
    %68 = vector.shape_cast %67 : vector<8xf32> to vector<8x1xf32>
    %69 = vector.broadcast %68 : vector<8x1xf32> to vector<8x4xf32>
    %70 = arith.subf %66, %69 : vector<8x4xf32>
    %71 = math.exp %70 : vector<8x4xf32>
    %cst_26 = arith.constant dense<0.000000e+00> : vector<8xf32>
    %72 = vector.multi_reduction <add>, %71, %cst_26 [1] : vector<8x4xf32> to vector<8xf32>
    %73 = vector.shape_cast %72 : vector<8xf32> to vector<8x1xf32>
    %74 = tpu.reciprocal %73 : vector<8x1xf32> -> vector<8x1xf32>
    %75 = vector.broadcast %74 : vector<8x1xf32> to vector<8x4xf32>
    %76 = arith.mulf %71, %75 : vector<8x4xf32>
    %cst_27 = arith.constant dense<0xFF800000> : vector<8xf32>
    %77 = vector.multi_reduction <maximumf>, %2, %cst_27 [1] : vector<8x4xf32> to vector<8xf32>
    %78 = vector.shape_cast %77 : vector<8xf32> to vector<8x1xf32>
    %79 = vector.broadcast %78 : vector<8x1xf32> to vector<8x4xf32>
    %80 = arith.subf %2, %79 : vector<8x4xf32>
    %81 = math.exp %80 : vector<8x4xf32>
    %cst_28 = arith.constant dense<0.000000e+00> : vector<8xf32>
    %82 = vector.multi_reduction <add>, %81, %cst_28 [1] : vector<8x4xf32> to vector<8xf32>
    %83 = vector.shape_cast %82 : vector<8xf32> to vector<8x1xf32>
    %84 = math.log %83 : vector<8x1xf32>
    %85 = vector.broadcast %78 : vector<8x1xf32> to vector<8x4xf32>
    %86 = arith.subf %2, %85 : vector<8x4xf32>
    %87 = vector.broadcast %84 : vector<8x1xf32> to vector<8x4xf32>
    %88 = arith.subf %86, %87 : vector<8x4xf32>
    %89 = arith.mulf %76, %88 : vector<8x4xf32>
    %cst_29 = arith.constant dense<0.000000e+00> : vector<8xf32>
    %90 = vector.multi_reduction <add>, %89, %cst_29 [1] : vector<8x4xf32> to vector<8xf32>
    %91 = vector.shape_cast %90 : vector<8xf32> to vector<8x1xf32>
    %cst_30 = arith.constant dense<0.000000e+00> : vector<1xf32>
    %92 = vector.multi_reduction <add>, %91, %cst_30 [0] : vector<8x1xf32> to vector<1xf32>
    %93 = vector.shape_cast %92 : vector<1xf32> to vector<1x1xf32>
    %cst_31 = arith.constant -1.250000e-01 : f32
    %94 = vector.broadcast %cst_31 : f32 to vector<1x1xf32>
    %95 = arith.mulf %93, %94 : vector<1x1xf32>
    %96 = arith.addf %64, %95 : vector<1x1xf32>
    %c0_32 = arith.constant 0 : index
    %c0_33 = arith.constant 0 : index
    %97 = vector.load %arg3[%c0_32, %c0_33] : memref<1x1xf32, #tpu.memory_space<vmem>>, vector<1x1xf32>
    tpu.vector_store %arg3[%c0_32, %c0_33], %96 {strides = array<i32>} : memref<1x1xf32, #tpu.memory_space<vmem>>, vector<1x1xf32>,
    return
  }
}

</mosaic_0001>

<bundles_post_ra>
// kernel: mdn_loss_pallas.1
= control target key start
LH: loop header
LB: loop body
LE: loop exit
PB: predicated region body
PF: predicated region fallthrough
CT: control target
= control target key end

     0   :  { %s2089_s0 = inlined_call_operand.vmem [shape: f32[8,4,48], index: 0, kind: input, shape index: {}]   ;;  %s2090_s1 = inlined_call_operand.vmem [shape: f32[8,24], index: 1, kind: input, shape index: {}]   ;;  %s2091_s2 = inlined_call_operand.vmem [shape: f32[8,4], index: 2, kind: input, shape index: {}]   ;;  %s2092_s3 = inlined_call_operand.hbm [shape: f32[1,1], index: 3, kind: output, shape index: {0}]   ;;  %s2093_s4 = inlined_call_operand.vmem [shape: s32[8,2], index: 4, kind: output, shape index: {1}]  }
   0x1   :  { %v17_v0 = vld [vmem:[%s2089_s0] sm:$0xf]  ;;  %v19_v6 = vld [vmem:[%s2089_s0 + $0x8] sm:$0xf]  ;;  %v18_v10 = vld [vmem:[%s2089_s0 + $0x4] sm:$0xf] }
   0x2   :  { %v25_v1 = vld [vmem:[%s2090_s1] sm:$0xff]  ;;  %v21_v16 = vld [vmem:[%s2089_s0 + $0x10] sm:$0xf] }
   0x3   :  { %v35_v2 = vperm.slane %v25_v1, 0  ;;  %v29_v3 = vrot.slane %v25_v1, 2  ;;  %v28_v4 = vrot.slane %v25_v1, 1  ;;  %v30_v5 = vrot.slane %v25_v1, 3 }
   0x4   :  { %v31_v11 = vrot.slane %v25_v1, 4  ;;  %v32_v12 = vrot.slane %v25_v1, 5 }
   0x5   :  { %v51_v7 = vsub.f32 %v17_v0, %v35_v2  ;;  %v37_v8 = vperm.slane %v29_v3, 0  ;;  %v36_v9 = vperm.slane %v28_v4, 0  ;;  %v38_v15 = vperm.slane %v30_v5, 0 }
   0x7   :  { %v59_v13 = vmul.f32 %v51_v7, %v51_v7  ;;  %v53_v14 = vsub.f32 %v19_v6, %v37_v8 }
   0x8   :  { %10 = vsyncpa [#allocation3], 0  ;;  %v20_v17 = vld [vmem:[%s2089_s0 + $0xc] sm:$0xf]  ;;  %v39_v18 = vperm.slane %v31_v11, 0  ;;  %s1367_s27 = smov 116   ;;  %v52_v20 = vsub.f32 %v18_v10, %v36_v9  ;;  %v228_v63 = vlaneseq }
   0x9   :  { %75 = vrot.lane.b32.xlu0 %v59_v13, %s1367_s27  ;;  %v61_v19 = vmul.f32 %v53_v14, %v53_v14  ;;  %v33_v21 = vrot.slane %v25_v1, 6  ;;  %v40_v23 = vperm.slane %v32_v12, 0  ;;  %v54_v24 = vsub.f32 %v20_v17, %v38_v15  ;;  %v1419_v26 = vld [vmem:[%s2089_s0 + $0x14] sm:$0xf]  ;;  %v23_v30 = vld [vmem:[%s2089_s0 + $0x18] sm:$0xf] }
   0xa   :  { %v55_v22 = vsub.f32 %v21_v16, %v39_v18  ;;  %v34_v25 = vrot.slane %v25_v1, 7  ;;  %v60_v28 = vmul.f32 %v52_v20, %v52_v20  ;;  %v24_v34 = vld [vmem:[%s2089_s0 + $0x1c] sm:$0xf]  ;;  %v1452_v9 = vand.u32 127, %v228_v63  ;;  %s1371_s28 = smov 24   ;;  %s1208_s6 = sshll.u32 %s2092_s3, 4  ;;  %s1209_s6 = int_to_ptr.hbm [resolvable:$true] %s1208_s6 }
   0xb   :  { %79 = vrot.lane.b32.xlu1 %v61_v19, %s1367_s27  ;;  %v41_v29 = vperm.slane %v33_v21, 0  ;;  %v56_v31 = vsub.f32 %v1419_v26, %v40_v23  ;;  %v62_v32 = vmul.f32 %v54_v24, %v54_v24  ;;  %vm203_vm0 = vcmask 93184  }
   0xc   :  { %v63_v27 = vmul.f32 %v55_v22, %v55_v22  ;;  %v42_v33 = vperm.slane %v34_v25, 0  ;;  %vm230_vm7 = vcmp.eq.s32.totalorder %v1452_v9, 11 }
   0xd   :  { %v57_v35 = vsub.f32 %v23_v30, %v41_v29  ;;  %v64_v36 = vmul.f32 %v56_v31, %v56_v31 }
   0xe   :  { %83 = vrot.lane.b32.xlu2 %v63_v27, %s1367_s27  ;;  %v58_v37 = vsub.f32 %v24_v34, %v42_v33 }
   0xf   :  { %v65_v38 = vmul.f32 %v57_v35, %v57_v35 }
  0x10   :  { %v66_v39 = vmul.f32 %v58_v37, %v58_v37 }
  0x11   :  { %77 = vrot.lane.b32.xlu0 %v60_v28, %s1367_s27 }
  0x13   :  { %81 = vrot.lane.b32.xlu1 %v62_v32, %s1367_s27 }
  0x16   :  { %85 = vrot.lane.b32.xlu2 %v64_v36, %s1367_s27 }
  0x19   :  { %87 = vrot.lane.b32.xlu0 %v65_v38, %s1367_s27 }
  0x1b   :  { %89 = vrot.lane.b32.xlu1 %v66_v39, %s1367_s27 }
  0x68   :  { %v84_v40 = vpop.permute.xlu2 %83 }
  0x69   :  { %v1428_v42 = vadd.f32 %v84_v40, %v63_v27 }
  0x6b   :  { %1263 = vrsqrt.f32 %v1428_v42  ;;  %vm162_vm5 = vcmp.eq.f32.partialorder %v1428_v42, inf  ;;  %vm164_vm13 = vcmp.eq.f32.partialorder %v1428_v42, 0.0 }
  0x70   :  { %v86_v41 = vpop.permute.xlu2 %85 }
  0x71   :  { %v1430_v43 = vadd.f32 %v86_v41, %v64_v36  ;;  %v1436_v48 = vpop.eup %1263 }
  0x72   :  { %v156_v50 = vmul.f32 %v1436_v48, %v1428_v42 }
  0x73   :  { %1265 = vrsqrt.f32 %v1430_v43  ;;  %vm174_vm6 = vcmp.eq.f32.partialorder %v1430_v43, inf  ;;  %vm176_vm12 = vcmp.eq.f32.partialorder %v1430_v43, 0.0 }
  0x74   :  { %v157_v59 = vmul.f32 %v1436_v48, %v156_v50 }
  0x76   :  { %v158_v2 = vmul.f32 0.5, %v157_v59 }
  0x78   :  { %v159_v16 = vsub.f32 1.5, %v158_v2 }
  0x79   :  { %v1266_v49 = vpop.eup %1265 }
  0x7a   :  { %v168_v54 = vmul.f32 %v1266_v49, %v1430_v43 }
  0x7b   :  { %v76_v44 = vpop.permute.xlu0 %75 }
  0x7c   :  { %v99_v45 = vadd.f32 %v76_v44, %v59_v13  ;;  %v169_v62 = vmul.f32 %v1266_v49, %v168_v54  ;;  %v160_v44 = vmul.f32 %v1436_v48, %v159_v16 }
  0x7d   :  { %v80_v46 = vpop.permute.xlu1 %79 }
  0x7e   :  { %1267 = vrsqrt.f32 %v99_v45  ;;  %v1434_v47 = vadd.f32 %v80_v46, %v61_v19  ;;  %v170_v8 = vmul.f32 0.5, %v169_v62  ;;  %vm114_vm1 = vcmp.eq.f32.partialorder %v99_v45, inf }
  0x7f   :  { %vm116_vm2 = vcmp.eq.f32.partialorder %v99_v45, 0.0  ;;  %v117_v21 = vand.u32 2147483648, %v99_v45 }
  0x80   :  { %1269 = vrsqrt.f32 %v1434_v47  ;;  %v171_v22 = vsub.f32 1.5, %v170_v8  ;;  %vm138_vm3 = vcmp.eq.f32.partialorder %v1434_v47, inf  ;;  %vm140_vm4 = vcmp.eq.f32.partialorder %v1434_v47, 0.0 }
  0x81   :  { %v141_v29 = vand.u32 2147483648, %v1434_v47 }
  0x82   :  { %v172_v36 = vmul.f32 %v1266_v49, %v171_v22 }
  0x83   :  { %v78_v51 = vpop.permute.xlu0 %77 }
  0x84   :  { %v1268_v52 = vpop.eup %1267  ;;  %v1441_v53 = vadd.f32 %v78_v51, %v60_v28 }
  0x85   :  { %v82_v55 = vpop.permute.xlu1 %81  ;;  %v108_v56 = vmul.f32 %v1268_v52, %v99_v45 }
  0x86   :  { %v1270_v57 = vpop.eup %1269  ;;  %1271 = vrsqrt.f32 %v1441_v53  ;;  %v1445_v58 = vadd.f32 %v82_v55, %v62_v32  ;;  %vm126_vm8 = vcmp.eq.f32.partialorder %v1441_v53, inf  ;;  %vm128_vm9 = vcmp.eq.f32.partialorder %v1441_v53, 0.0 }
  0x87   :  { %v109_v60 = vmul.f32 %v1268_v52, %v108_v56  ;;  %v132_v61 = vmul.f32 %v1270_v57, %v1434_v47  ;;  %v129_v51 = vand.u32 2147483648, %v1441_v53 }
  0x88   :  { %1273 = vrsqrt.f32 %v1445_v58  ;;  %vm150_vm10 = vcmp.eq.f32.partialorder %v1445_v58, inf  ;;  %v153_v59 = vand.u32 2147483648, %v1445_v58  ;;  %vm152_vm11 = vcmp.eq.f32.partialorder %v1445_v58, 0.0 }
  0x89   :  { %v110_v0 = vmul.f32 0.5, %v109_v60  ;;  %v133_v1 = vmul.f32 %v1270_v57, %v132_v61  ;;  %v161_v60 = vmul.f32 %v160_v44, %v1428_v42 }
  0x8b   :  { %v88_v3 = vpop.permute.xlu0 %87  ;;  %v111_v4 = vsub.f32 1.5, %v110_v0  ;;  %v134_v5 = vmul.f32 0.5, %v133_v1  ;;  %v177_v0 = vand.u32 2147483648, %v1430_v43 }
  0x8c   :  { %v1272_v6 = vpop.eup %1271  ;;  %v1450_v7 = vadd.f32 %v88_v3, %v65_v38 }
  0x8d   :  { %v90_v10 = vpop.permute.xlu1 %89  ;;  %v112_v11 = vmul.f32 %v1268_v52, %v111_v4  ;;  %v135_v12 = vsub.f32 1.5, %v134_v5  ;;  %v120_v13 = vmul.f32 %v1272_v6, %v1441_v53  ;;  %v173_v52 = vmul.f32 %v172_v36, %v1430_v43 }
  0x8e   :  { %v1274_v14 = vpop.eup %1273  ;;  %1275 = vrsqrt.f32 %v1450_v7  ;;  %v1456_v15 = vadd.f32 %v90_v10, %v66_v39  ;;  %vm186_vm14 = vcmp.eq.f32.partialorder %v1450_v7, inf  ;;  %vm188_vm15 = vcmp.eq.f32.partialorder %v1450_v7, 0.0 }
  0x8f   :  { %v113_v17 = vmul.f32 %v112_v11, %v99_v45  ;;  %v136_v18 = vmul.f32 %v1270_v57, %v135_v12  ;;  %v121_v19 = vmul.f32 %v1272_v6, %v120_v13  ;;  %v144_v20 = vmul.f32 %v1274_v14, %v1445_v58 }
  0x90   :  { %1277 = vrsqrt.f32 %v1456_v15  ;;  %v175_v3 = vsel %vm174_vm6, %v1430_v43, %v173_v52  ;;  %v163_v11 = vsel %vm162_vm5, %v1428_v42, %v161_v60  ;;  %v189_v43 = vand.u32 2147483648, %v1450_v7 }
  0x91   :  { %v115_v23 = vsel %vm114_vm1, %v99_v45, %v113_v17  ;;  %v137_v24 = vmul.f32 %v136_v18, %v1434_v47  ;;  %v122_v25 = vmul.f32 0.5, %v121_v19  ;;  %v145_v27 = vmul.f32 %v1274_v14, %v144_v20 }
  0x92   :  { %v1461_v28 = vsel %vm116_vm2, %v117_v21, %v115_v23  ;;  %v1478_v45 = vshrl.u32 %v228_v63, 7  ;;  %v178_v12 = vsel %vm176_vm12, %v177_v0, %v175_v3  ;;  %vm198_vm1 = vcmp.eq.f32.partialorder %v1456_v15, inf }
  0x93   :  { %v204_v30 = vsel %vm203_vm0, %v1461_v28, 0.0  ;;  %v139_v31 = vsel %vm138_vm3, %v1434_v47, %v137_v24  ;;  %v123_v32 = vsub.f32 1.5, %v122_v25  ;;  %v146_v33 = vmul.f32 0.5, %v145_v27 }
  0x94   :  { %v1276_v34 = vpop.eup %1275  ;;  %205 = vadd.xlane.f32.xlu2 %v204_v30  ;;  %v1469_v35 = vsel %vm140_vm4, %v141_v29, %v139_v31  ;;  %1227 = vset.pattern.permute.xlu0 %v1478_v45  ;;  %v219_v18 = vsel %vm203_vm0, %v178_v12, 0.0  ;;  %v231_v23 = vsel %vm230_vm7, %v1461_v28, 0.0  ;;  %v201_v25 = vand.u32 2147483648, %v1456_v15 }
  0x95   :  { %v210_v37 = vsel %vm203_vm0, %v1469_v35, 0.0  ;;  %v124_v38 = vmul.f32 %v1272_v6, %v123_v32  ;;  %v147_v39 = vsub.f32 1.5, %v146_v33  ;;  %v180_v40 = vmul.f32 %v1276_v34, %v1450_v7 }
  0x96   :  { %v1278_v41 = vpop.eup %1277  ;;  %211 = vadd.xlane.f32.xlu1 %v210_v37  ;;  %vm200_vm2 = vcmp.eq.f32.partialorder %v1456_v15, 0.0  ;;  %v239_v29 = vsel %vm203_vm0, %v231_v23, 0.0  ;;  %v233_v32 = vsel %vm230_vm7, %v1469_v35, 0.0  ;;  %v236_v36 = vsel %vm230_vm7, %v178_v12, 0.0 }
  0x97   :  { %v125_v46 = vmul.f32 %v124_v38, %v1441_v53  ;;  %v148_v47 = vmul.f32 %v1274_v14, %v147_v39  ;;  %v181_v49 = vmul.f32 %v1276_v34, %v180_v40  ;;  %v192_v50 = vmul.f32 %v1278_v41, %v1456_v15 }
  0x98   :  { %v254_v38 = vsel %vm203_vm0, %v236_v36, 0.0  ;;  %vm279_vm3 = vcmask 1041409   ;;  %vm283_vm4 = vcmask 1043459   ;;  %vm285_vm5 = vcmask 1044484  }
  0x99   :  { %v127_v48 = vsel %vm126_vm8, %v1441_v53, %v125_v46  ;;  %v149_v54 = vmul.f32 %v148_v47, %v1445_v58  ;;  %v182_v55 = vmul.f32 0.5, %v181_v49  ;;  %v193_v56 = vmul.f32 %v1278_v41, %v192_v50 }
  0x9a   :  { %v130_v57 = vsel %vm128_vm9, %v129_v51, %v127_v48  ;;  %vm287_vm6 = vcmask 1045509   ;;  %vm2095_vm8 = vcmask 1047559   ;;  %vm2094_vm9 = vcmask 31744  }
  0x9b   :  { %v207_v61 = vsel %vm203_vm0, %v130_v57, 0.0  ;;  %v151_v62 = vsel %vm150_vm10, %v1445_v58, %v149_v54  ;;  %v183_v63 = vsub.f32 1.5, %v182_v55  ;;  %v194_v1 = vmul.f32 0.5, %v193_v56 }
  0x9c   :  { %208 = vadd.xlane.f32.xlu0 %v207_v61  ;;  %v154_v53 = vsel %vm152_vm11, %v153_v59, %v151_v62  ;;  %v165_v58 = vand.u32 2147483648, %v1428_v42  ;;  %v232_v24 = vsel %vm230_vm7, %v130_v57, 0.0 }
  0x9d   :  { %v213_v2 = vsel %vm203_vm0, %v154_v53, 0.0  ;;  %v184_v4 = vmul.f32 %v1276_v34, %v183_v63  ;;  %v234_v5 = vsel %vm230_vm7, %v154_v53, 0.0  ;;  %v195_v6 = vsub.f32 1.5, %v194_v1 }
  0x9e   :  { %214 = vadd.xlane.f32.xlu2 %v213_v2  ;;  %v248_v8 = vsel %vm203_vm0, %v234_v5, 0.0  ;;  %v166_v17 = vsel %vm164_vm13, %v165_v58, %v163_v11  ;;  %v242_v30 = vsel %vm203_vm0, %v232_v24, 0.0  ;;  %v1368_v2 = vmov 0  }
  0x9f   :  { %v185_v10 = vmul.f32 %v184_v4, %v1450_v7  ;;  %v196_v13 = vmul.f32 %v1278_v41, %v195_v6  ;;  %v216_v22 = vsel %vm203_vm0, %v166_v17, 0.0  ;;  %v235_v28 = vsel %vm230_vm7, %v166_v17, 0.0  ;;  %1229 = vset.pattern.permute.xlu2 %v1368_v2  ;;  %1228 = vset.pattern.permute.xlu1 %v1368_v2 }
  0xa0   :  { %v251_v33 = vsel %vm203_vm0, %v235_v28, 0.0 }
  0xa1   :  { %v187_v14 = vsel %vm186_vm14, %v1450_v7, %v185_v10  ;;  %v197_v20 = vmul.f32 %v196_v13, %v1456_v15 }
  0xa2   :  { %v190_v16 = vsel %vm188_vm15, %v189_v43, %v187_v14 }
  0xa3   :  { %v222_v19 = vsel %vm203_vm0, %v190_v16, 0.0  ;;  %v237_v42 = vsel %vm230_vm7, %v190_v16, 0.0  ;;  %v199_v7 = vsel %vm198_vm1, %v1456_v15, %v197_v20  ;;  %v245_v15 = vsel %vm203_vm0, %v233_v32, 0.0 }
  0xa4   :  { %220 = vadd.xlane.f32.xlu0 %v219_v18  ;;  %223 = vadd.xlane.f32.xlu1 %v222_v19  ;;  %v257_v21 = vsel %vm203_vm0, %v237_v42, 0.0  ;;  %v202_v27 = vsel %vm200_vm2, %v201_v25, %v199_v7 }
  0xa5   :  { %v225_v31 = vsel %vm203_vm0, %v202_v27, 0.0  ;;  %v238_v34 = vsel %vm230_vm7, %v202_v27, 0.0  ;;  %vm2096_vm7 = vcmask 1046534  }
  0xa6   :  { %217 = vadd.xlane.f32.xlu2 %v216_v22  ;;  %v260_v37 = vsel %vm203_vm0, %v238_v34, 0.0  ;;  %vm281_vm0 = vcmask 1042434  }
  0xac   :  { %240 = vadd.xlane.f32.xlu0 %v239_v29  ;;  %243 = vadd.xlane.f32.xlu1 %v242_v30 }
  0xae   :  { %226 = vadd.xlane.f32.xlu2 %v225_v31 }
  0xb4   :  { %252 = vadd.xlane.f32.xlu1 %v251_v33 }
  0xb6   :  { %246 = vadd.xlane.f32.xlu2 %v245_v15 }
  0xbc   :  { %261 = vadd.xlane.f32.xlu1 %v260_v37 }
  0xbe   :  { %255 = vadd.xlane.f32.xlu2 %v254_v38 }
  0xc0   :  { %327 = vperm.xlu0 %1227, %v1452_v9  }
  0xc8   :  { %1230 = vset.pattern.permute.xlu0 %v1368_v2 }
  0xea   :  { %249 = vadd.xlane.f32.xlu0 %v248_v8 }
  0xf2   :  { %258 = vadd.xlane.f32.xlu0 %v257_v21 }
 0x107   :  { %v1547_v35 = vpop.xlane.xlu2 %205 }
 0x108   :  { %v271_v44 = vperm.slane %v1547_v35, %v1452_v9 }
 0x109   :  { %v1557_v46 = vpop.xlane.xlu1 %211 }
 0x10a   :  { %v273_v49 = vperm.slane %v1557_v46, %v1452_v9 }
 0x10f   :  { %v1549_v39 = vpop.xlane.xlu0 %208 }
 0x110   :  { %v272_v41 = vperm.slane %v1549_v39, %v1452_v9 }
 0x111   :  { %v1551_v40 = vpop.xlane.xlu2 %214 }
 0x112   :  { %v280_v47 = vsel %vm279_vm3, %v272_v41, %v271_v44  ;;  %v274_v50 = vperm.slane %v1551_v40, %v1452_v9 }
 0x113   :  { %v282_v51 = vsel %vm281_vm0, %v273_v49, %v280_v47 }
 0x114   :  { %v284_v55 = vsel %vm283_vm4, %v274_v50, %v282_v51 }
 0x117   :  { %v1569_v54 = vpop.xlane.xlu0 %220  ;;  %v1573_v57 = vpop.xlane.xlu1 %223 }
 0x118   :  { %v276_v59 = vperm.slane %v1569_v54, %v1452_v9  ;;  %v277_v61 = vperm.slane %v1573_v57, %v1452_v9 }
 0x119   :  { %v1565_v52 = vpop.xlane.xlu2 %217 }
 0x11a   :  { %v275_v48 = vperm.slane %v1565_v52, %v1452_v9 }
 0x11c   :  { %v286_v56 = vsel %vm285_vm5, %v275_v48, %v284_v55 }
 0x11d   :  { %v288_v60 = vsel %vm287_vm6, %v276_v59, %v286_v56 }
 0x11e   :  { %v290_v53 = vsel %vm2096_vm7, %v277_v61, %v288_v60 }
 0x11f   :  { %v1594_v5 = vpop.xlane.xlu0 %240  ;;  %v244_v42 = vpop.xlane.xlu1 %243 }
 0x120   :  { %v400_v24 = vperm.slane %v244_v42, %v1452_v9  ;;  %v399_v25 = vperm.slane %v1594_v5, %v1452_v9 }
 0x121   :  { %v1580_v62 = vpop.xlane.xlu2 %226 }
 0x122   :  { %v278_v63 = vperm.slane %v1580_v62, %v1452_v9  ;;  %v407_v28 = vsel %vm279_vm3, %v400_v24, %v399_v25  ;;  %v1667_v25 = vmul.f32 -0.083333336, %v1549_v39 }
 0x124   :  { %v292_v0 = vsel %vm2095_vm8, %v278_v63, %v290_v53 }
 0x125   :  { %v295_v1 = vsel %vm2094_vm9, %v292_v0, inf }
 0x126   :  { %296 = vmin.xlane.f32.xlu2 %v295_v1 }
 0x127   :  { %v253_v27 = vpop.xlane.xlu1 %252 }
 0x128   :  { %v403_v34 = vperm.slane %v253_v27, %v1452_v9 }
 0x129   :  { %v1590_v3 = vpop.xlane.xlu2 %246 }
 0x12a   :  { %v401_v29 = vperm.slane %v1590_v3, %v1452_v9 }
 0x12c   :  { %v408_v32 = vsel %vm281_vm0, %v401_v29, %v407_v28  ;;  %v1671_v29 = vmul.f32 -0.083333336, %v1547_v35 }
 0x12f   :  { %v262_v41 = vpop.xlane.xlu1 %261 }
 0x130   :  { %v406_v49 = vperm.slane %v262_v41, %v1452_v9 }
 0x131   :  { %v1592_v4 = vpop.xlane.xlu2 %255 }
 0x132   :  { %v1596_v11 = vpop.permute.xlu0 %327  ;;  %v404_v38 = vperm.slane %v1592_v4, %v1452_v9 }
 0x15d   :  { %v250_v23 = vpop.xlane.xlu0 %249 }
 0x15e   :  { %v402_v30 = vperm.slane %v250_v23, %v1452_v9 }
 0x160   :  { %v409_v33 = vsel %vm283_vm4, %v402_v30, %v408_v32  ;;  %v906_v32 = vperm.slane %v1667_v25, %v1452_v9 }
 0x161   :  { %v410_v37 = vsel %vm285_vm5, %v403_v34, %v409_v33  ;;  %v1679_v33 = vmul.f32 -0.083333336, %v1557_v46  ;;  %v905_v34 = vperm.slane %v1671_v29, %v1452_v9 }
 0x162   :  { %v411_v44 = vsel %vm287_vm6, %v404_v38, %v410_v37  ;;  %v1689_v37 = vmul.f32 -0.083333336, %v1565_v52 }
 0x163   :  { %v913_v38 = vsel %vm279_vm3, %v906_v32, %v905_v34 }
 0x165   :  { %v1623_v15 = vpop.xlane.xlu0 %258 }
 0x166   :  { %v405_v36 = vperm.slane %v1623_v15, %v1452_v9 }
 0x168   :  { %v412_v47 = vsel %vm2096_vm7, %v405_v36, %v411_v44 }
 0x169   :  { %v413_v50 = vsel %vm2095_vm8, %v406_v49, %v412_v47  ;;  %v1701_v49 = vmul.f32 -0.083333336, %v1569_v54 }
 0x16a   :  { %v415_v51 = vsel %vm2094_vm9, %v413_v50, inf }
 0x199   :  { %v297_v58 = vpop.xlane.xlu2 %296 }
 0x19a   :  { %v305_v6 = vperm.slane %v297_v58, 6  ;;  %v300_v8 = vperm.slane %v297_v58, 1  ;;  %v299_v10 = vperm.slane %v297_v58, 0  ;;  %v302_v14 = vperm.slane %v297_v58, 3 }
 0x19b   :  { %v301_v16 = vperm.slane %v297_v58, 2  ;;  %v304_v19 = vperm.slane %v297_v58, 5  ;;  %v303_v20 = vperm.slane %v297_v58, 4  ;;  %v306_v7 = vperm.slane %v297_v58, 7 }
 0x19c   :  { %vm321_vm10 = vcmp.le.f32.partialorder %v1573_v57, %v305_v6  ;;  %vm316_vm11 = vcmp.le.f32.partialorder %v1549_v39, %v300_v8  ;;  %vm315_vm12 = vcmp.le.f32.partialorder %v1547_v35, %v299_v10  ;;  %vm318_vm13 = vcmp.le.f32.partialorder %v1551_v40, %v302_v14 }
 0x19d   :  { %v335_v12 = vsel %vm321_vm10, %v1596_v11, 4  ;;  %v330_v43 = vsel %vm316_vm11, %v1596_v11, 4  ;;  %v329_v13 = vsel %vm315_vm12, %v1596_v11, 4  ;;  %vm317_vm14 = vcmp.le.f32.partialorder %v1557_v46, %v301_v16 }
 0x19e   :  { %356 = vperm.xlu0 %1230, %v335_v12   ;;  %341 = vperm.xlu2 %1229, %v330_v43   ;;  %v332_v17 = vsel %vm318_vm13, %v1596_v11, 4  ;;  %v331_v18 = vsel %vm317_vm14, %v1596_v11, 4  ;;  %vm320_vm15 = vcmp.le.f32.partialorder %v1569_v54, %v304_v19  ;;  %vm319_vm1 = vcmp.le.f32.partialorder %v1565_v52, %v303_v20 }
 0x19f   :  { %338 = vperm.xlu1 %1228, %v329_v13   ;;  %v334_v21 = vsel %vm320_vm15, %v1596_v11, 4  ;;  %v333_v22 = vsel %vm319_vm1, %v1596_v11, 4  ;;  %vm322_vm2 = vcmp.le.f32.partialorder %v1580_v62, %v306_v7  ;;  %v1685_v35 = vmul.f32 -0.083333336, %v1551_v40 }
 0x1a0   :  { %v336_v31 = vsel %vm322_vm2, %v1596_v11, 4  ;;  %v909_v40 = vperm.slane %v1689_v37, %v1452_v9 }
 0x1a1   :  { %v908_v44 = vperm.slane %v1685_v35, %v1452_v9 }
 0x1a6   :  { %347 = vperm.xlu2 %1229, %v332_v17  }
 0x1a7   :  { %344 = vperm.xlu1 %1228, %v331_v18  }
 0x1ae   :  { %353 = vperm.xlu2 %1229, %v334_v21  }
 0x1af   :  { %350 = vperm.xlu1 %1228, %v333_v22  }
 0x1b7   :  { %359 = vperm.xlu1 %1228, %v336_v31  }
 0x1c8   :  { %416 = vmin.xlane.f32.xlu0 %v415_v51  ;;  %v1705_v51 = vmul.f32 -0.083333336, %v1580_v62 }
 0x1f8   :  { %v342_v12 = vpop.permute.xlu2 %341 }
 0x1f9   :  { %v362_v18 = vperm.slane %v342_v12, %v1452_v9 }
 0x210   :  { %v357_v48 = vpop.permute.xlu0 %356 }
 0x211   :  { %v339_v58 = vpop.permute.xlu1 %338  ;;  %v367_v28 = vperm.slane %v357_v48, %v1452_v9  ;;  %v1708_v48 = vmul.f32 -0.083333336, %v1573_v57 }
 0x212   :  { %v361_v16 = vperm.slane %v339_v58, %v1452_v9 }
 0x214   :  { %v369_v19 = vsel %vm279_vm3, %v362_v18, %v361_v16 }
 0x219   :  { %v345_v43 = vpop.permute.xlu1 %344 }
 0x21a   :  { %v363_v17 = vperm.slane %v345_v43, %v1452_v9 }
 0x21c   :  { %v370_v20 = vsel %vm281_vm0, %v363_v17, %v369_v19 }
 0x221   :  { %v351_v14 = vpop.permute.xlu1 %350 }
 0x229   :  { %v360_v24 = vpop.permute.xlu1 %359 }
 0x22a   :  { %v368_v31 = vperm.slane %v360_v24, %v1452_v9 }
 0x23b   :  { %v1636_v55 = vpop.xlane.xlu0 %416 }
 0x23c   :  { %v421_v56 = vperm.slane %v1636_v55, 2  ;;  %v420_v59 = vperm.slane %v1636_v55, 1  ;;  %v419_v60 = vperm.slane %v1636_v55, 0  ;;  %v424_v0 = vperm.slane %v1636_v55, 5 }
 0x23d   :  { %v423_v1 = vperm.slane %v1636_v55, 4  ;;  %v422_v6 = vperm.slane %v1636_v55, 3  ;;  %v426_v10 = vperm.slane %v1636_v55, 7 }
 0x23e   :  { %vm437_vm10 = vcmp.le.f32.partialorder %v1590_v3, %v421_v56  ;;  %vm436_vm11 = vcmp.le.f32.partialorder %v244_v42, %v420_v59  ;;  %vm435_vm12 = vcmp.le.f32.partialorder %v1594_v5, %v419_v60  ;;  %vm440_vm13 = vcmp.le.f32.partialorder %v1592_v4, %v424_v0  ;;  %v348_v4 = vpop.permute.xlu2 %347 }
 0x23f   :  { %v445_v61 = vsel %vm437_vm10, %v1596_v11, 4  ;;  %v444_v63 = vsel %vm436_vm11, %v1596_v11, 4  ;;  %v443_v53 = vsel %vm435_vm12, %v1596_v11, 4  ;;  %vm439_vm14 = vcmp.le.f32.partialorder %v253_v27, %v423_v1 }
 0x240   :  { %458 = vperm.xlu0 %1230, %v445_v61   ;;  %455 = vperm.xlu1 %1228, %v444_v63   ;;  %vm438_vm15 = vcmp.le.f32.partialorder %v250_v23, %v422_v6  ;;  %v448_v3 = vsel %vm440_vm13, %v1596_v11, 4  ;;  %v447_v5 = vsel %vm439_vm14, %v1596_v11, 4  ;;  %vm442_vm1 = vcmp.le.f32.partialorder %v262_v41, %v426_v10 }
 0x241   :  { %452 = vperm.xlu2 %1229, %v443_v53   ;;  %v446_v8 = vsel %vm438_vm15, %v1596_v11, 4  ;;  %v450_v13 = vsel %vm442_vm1, %v1596_v11, 4  ;;  %v365_v42 = vperm.slane %v351_v14, %v1452_v9  ;;  %v364_v21 = vperm.slane %v348_v4, %v1452_v9 }
 0x242   :  { %v907_v41 = vperm.slane %v1679_v33, %v1452_v9  ;;  %v910_v59 = vperm.slane %v1701_v49, %v1452_v9  ;;  %v912_v61 = vperm.slane %v1705_v51, %v1452_v9  ;;  %v911_v63 = vperm.slane %v1708_v48, %v1452_v9 }
 0x243   :  { %v371_v7 = vsel %vm283_vm4, %v364_v21, %v370_v20  ;;  %v425_v0 = vperm.slane %v1636_v55, 6  ;;  %vm505_vm11 = vcmask 7168   ;;  %vm575_vm14 = vcmask 388096  }
 0x244   :  { %v372_v23 = vsel %vm285_vm5, %v365_v42, %v371_v7  ;;  %v914_v47 = vsel %vm281_vm0, %v907_v41, %v913_v38  ;;  %vm507_vm15 = vcmask 15368  }
 0x245   :  { %v915_v50 = vsel %vm283_vm4, %v908_v44, %v914_v47  ;;  %vm441_vm2 = vcmp.le.f32.partialorder %v1623_v15, %v425_v0 }
 0x246   :  { %v354_v22 = vpop.permute.xlu2 %353  ;;  %v916_v56 = vsel %vm285_vm5, %v909_v40, %v915_v50  ;;  %v449_v1 = vsel %vm441_vm2, %v1596_v11, 4  ;;  %v1369_v40 = vmov 0.0  }
 0x247   :  { %v366_v27 = vperm.slane %v354_v22, %v1452_v9  ;;  %v917_v54 = vsel %vm287_vm6, %v910_v59, %v916_v56 }
 0x248   :  { %467 = vperm.xlu0 %1230, %v448_v3   ;;  %464 = vperm.xlu1 %1228, %v447_v5   ;;  %v918_v62 = vsel %vm2096_vm7, %v911_v63, %v917_v54 }
 0x249   :  { %461 = vperm.xlu2 %1229, %v446_v8   ;;  %v373_v30 = vsel %vm287_vm6, %v366_v27, %v372_v23  ;;  %v919_v57 = vsel %vm2095_vm8, %v912_v61, %v918_v62 }
 0x24a   :  { %v374_v39 = vsel %vm2096_vm7, %v367_v28, %v373_v30  ;;  %v921_v53 = vsel %vm2094_vm9, %v919_v57, -inf }
 0x24b   :  { %v375_v36 = vsel %vm2095_vm8, %v368_v31, %v374_v39 }
 0x24c   :  { %v376_v46 = vsel %vm2094_vm9, %v375_v36, 2147483647 }
 0x24d   :  { %v378_v52 = vshra.s32 %v376_v46, 16  ;;  %v377_v10 = vand.u32 65535, %v376_v46 }
 0x24f   :  { %v380_v60 = vcvt.s32.f32 %v378_v52  ;;  %v379_v4 = vcvt.s32.f32 %v377_v10 }
 0x250   :  { %473 = vperm.xlu1 %1228, %v450_v13   ;;  %1242 = vset.pattern.permute.xlu0 %v1478_v45 }
 0x258   :  { %1231 = vset.pattern.permute.xlu1 %v1478_v45 }
 0x272   :  { %381 = vmin.xlane.f32.xlu2 %v380_v60 }
 0x27a   :  { %922 = vmax.xlane.f32.xlu1 %v921_v53 }
 0x28a   :  { %470 = vperm.xlu2 %1229, %v449_v1  }
 0x292   :  { %1248 = vset.pattern.permute.xlu2 %v1478_v45 }
 0x29b   :  { %v453_v58 = vpop.permute.xlu2 %452 }
 0x29c   :  { %v475_v43 = vperm.slane %v453_v58, %v1452_v9 }
 0x2a3   :  { %v462_v3 = vpop.permute.xlu2 %461 }
 0x2a4   :  { %v478_v18 = vperm.slane %v462_v3, %v1452_v9 }
 0x2b2   :  { %v456_v6 = vpop.permute.xlu1 %455  ;;  %v459_v5 = vpop.permute.xlu0 %458 }
 0x2b3   :  { %v476_v8 = vperm.slane %v456_v6, %v1452_v9  ;;  %v477_v13 = vperm.slane %v459_v5, %v1452_v9 }
 0x2b5   :  { %v483_v55 = vsel %vm279_vm3, %v476_v8, %v475_v43 }
 0x2b6   :  { %v484_v14 = vsel %vm281_vm0, %v477_v13, %v483_v55 }
 0x2b7   :  { %v485_v20 = vsel %vm283_vm4, %v478_v18, %v484_v14  ;;  %v1776_v18 = vld [vmem:[%s2091_s2] sm:$0xff] }
 0x2ba   :  { %v465_v12 = vpop.permute.xlu1 %464  ;;  %v468_v16 = vpop.permute.xlu0 %467 }
 0x2bb   :  { %v479_v17 = vperm.slane %v465_v12, %v1452_v9  ;;  %v480_v19 = vperm.slane %v468_v16, %v1452_v9 }
 0x2bd   :  { %v486_v42 = vsel %vm285_vm5, %v479_v17, %v485_v20 }
 0x2be   :  { %v487_v24 = vsel %vm287_vm6, %v480_v19, %v486_v42  ;;  %v1055_v42 = vsel %vm2094_vm9, %v1776_v18, -inf }
 0x2c2   :  { %v474_v21 = vpop.permute.xlu1 %473 }
 0x2c3   :  { %v482_v23 = vperm.slane %v474_v21, %v1452_v9 }
 0x2e5   :  { %v382_v15 = vpop.xlane.xlu2 %381 }
 0x2e6   :  { %vm383_vm10 = vcmp.eq.f32.partialorder %v380_v60, %v382_v15  ;;  %v388_v34 = vcvt.f32.s32 %v382_v15 }
 0x2e7   :  { %v384_v11 = vsel %vm383_vm10, %v379_v4, inf }
 0x2e8   :  { %385 = vmin.xlane.f32.xlu1 %v384_v11  ;;  %v389_v38 = vshll.u32 %v388_v34, 16 }
 0x2ed   :  { %v471_v22 = vpop.permute.xlu2 %470  ;;  %v1741_v39 = vpop.xlane.xlu1 %922 }
 0x2ee   :  { %v481_v7 = vperm.slane %v471_v22, %v1452_v9  ;;  %v928_v46 = vperm.slane %v1741_v39, 3  ;;  %v932_v62 = vperm.slane %v1741_v39, 7  ;;  %v927_v4 = vperm.slane %v1741_v39, 2 }
 0x2ef   :  { %v929_v16 = vperm.slane %v1741_v39, 4 }
 0x2f0   :  { %v488_v27 = vsel %vm2096_vm7, %v481_v7, %v487_v24  ;;  %v944_v47 = vsub.f32 %v1685_v35, %v928_v46  ;;  %v948_v1 = vsub.f32 %v1705_v51, %v932_v62  ;;  %v925_v51 = vperm.slane %v1741_v39, 0  ;;  %v1333_v46 = vld [vmem:[%s2089_s0 + $0x4] sm:$0xf] }
 0x2f1   :  { %v489_v30 = vsel %vm2095_vm8, %v482_v23, %v488_v27  ;;  %v943_v11 = vsub.f32 %v1679_v33, %v927_v4  ;;  %v930_v33 = vperm.slane %v1741_v39, 5  ;;  %v926_v7 = vperm.slane %v1741_v39, 1 }
 0x2f2   :  { %v490_v31 = vsel %vm2094_vm9, %v489_v30, 2147483647  ;;  %v955_v63 = vmul.f32 1.442695, %v944_v47  ;;  %v963_v5 = vmul.f32 1.442695, %v948_v1  ;;  %v941_v13 = vsub.f32 %v1671_v29, %v925_v51 }
 0x2f3   :  { %v492_v28 = vshra.s32 %v490_v31, 16  ;;  %v491_v57 = vand.u32 65535, %v490_v31  ;;  %v953_v14 = vmul.f32 1.442695, %v943_v11  ;;  %v945_v29 = vsub.f32 %v1689_v37, %v929_v16  ;;  %v1334_v47 = vld [vmem:[%s2089_s0] sm:$0xf] }
 0x2f4   :  { %1279 = vpow2.f32 %v955_v63  ;;  %v949_v15 = vmul.f32 1.442695, %v941_v13  ;;  %v946_v21 = vsub.f32 %v1701_v49, %v930_v33  ;;  %v942_v23 = vsub.f32 %v1667_v25, %v926_v7  ;;  %v1337_v11 = vld [vmem:[%s2089_s0 + $0x8] sm:$0xf] }
 0x2f5   :  { %v494_v32 = vcvt.s32.f32 %v492_v28  ;;  %v493_v58 = vcvt.s32.f32 %v491_v57  ;;  %1281 = vpow2.f32 %v963_v5  ;;  %v957_v19 = vmul.f32 1.442695, %v945_v29 }
 0x2f6   :  { %1283 = vpow2.f32 %v949_v15  ;;  %v959_v37 = vmul.f32 1.442695, %v946_v21  ;;  %v951_v27 = vmul.f32 1.442695, %v942_v23  ;;  %v931_v30 = vperm.slane %v1741_v39, 6 }
 0x2f7   :  { %495 = vmin.xlane.f32.xlu0 %v494_v32  ;;  %1285 = vpow2.f32 %v953_v14  ;;  %v1336_v15 = vld [vmem:[%s2089_s0 + $0xc] sm:$0xf] }
 0x2f8   :  { %1287 = vpow2.f32 %v957_v19  ;;  %v947_v49 = vsub.f32 %v1708_v48, %v931_v30 }
 0x2f9   :  { %1289 = vpow2.f32 %v959_v37 }
 0x2fa   :  { %v1754_v8 = vpop.eup %1279  ;;  %1291 = vpow2.f32 %v951_v27  ;;  %v961_v31 = vmul.f32 1.442695, %v947_v49 }
 0x2fb   :  { %v1758_v10 = vpop.eup %1281 }
 0x2fc   :  { %v1768_v17 = vpop.eup %1283  ;;  %1293 = vpow2.f32 %v961_v31 }
 0x2fd   :  { %v1779_v20 = vpop.eup %1285 }
 0x2fe   :  { %v1785_v22 = vpop.eup %1287 }
 0x2ff   :  { %v1790_v24 = vpop.eup %1289 }
 0x300   :  { %v1796_v28 = vpop.eup %1291 }
 0x35b   :  { %v386_v36 = vpop.xlane.xlu1 %385 }
 0x35c   :  { %v387_v41 = vcvt.f32.s32 %v386_v36 }
 0x35e   :  { %v390_v44 = vadd.s32 %v389_v38, %v387_v41 }
 0x360   :  { %506 = vst.msk [vmem:[%s2093_s4] sm:$0xff] %vm505_vm11, %v390_v44  ;;  %vm509_vm12 = vcmp.eq.s32.totalorder %v1452_v9, %v390_v44 }
 0x361   :  { %v510_v52 = vsel %vm509_vm12, 1.0, %v1369_v40 }
 0x362   :  { %v511_v50 = vperm.slane %v510_v52, 0  ;;  %v518_v56 = vperm.slane %v510_v52, 1  ;;  %v539_v59 = vperm.slane %v510_v52, 4  ;;  %v546_v60 = vperm.slane %v510_v52, 5 }
 0x363   :  { %v525_v53 = vperm.slane %v510_v52, 2  ;;  %v532_v0 = vperm.slane %v510_v52, 3  ;;  %v553_v12 = vperm.slane %v510_v52, 6  ;;  %v560_v43 = vperm.slane %v510_v52, 7  ;;  %v1335_v52 = vld [vmem:[%s2089_s0 + $0x10] sm:$0xf] }
 0x364   :  { %v1232_v61 = vpack.i.bf16 %v518_v56, %v511_v50  ;;  %v1243_v54 = vpack.i.bf16 %v546_v60, %v539_v59 }
 0x365   :  { %v1237_v3 = vpack.i.bf16 %v532_v0, %v525_v53  ;;  %v1249_v55 = vpack.i.bf16 %v560_v43, %v553_v12 }
 0x366   :  { %1233 = vperm.xlu1 %1231, %v1232_v61   ;;  %1244 = vperm.xlu0 %1242, %v1243_v54  }
 0x36a   :  { %v1751_v35 = vpop.xlane.xlu0 %495 }
 0x36b   :  { %vm497_vm13 = vcmp.eq.f32.partialorder %v494_v32, %v1751_v35  ;;  %v1799_v32 = vpop.eup %1293  ;;  %v502_v41 = vcvt.f32.s32 %v1751_v35 }
 0x36c   :  { %v498_v6 = vsel %vm497_vm13, %v493_v58, inf }
 0x36d   :  { %499 = vmin.xlane.f32.xlu2 %v498_v6  ;;  %v503_v53 = vshll.u32 %v502_v41, 16 }
 0x36e   :  { %1238 = vperm.xlu1 %1231, %v1237_v3   ;;  %1256 = vset.pattern.permute.xlu0 %v1368_v2 }
 0x36f   :  { %983 = vperm.xlu0 %1256, %v1754_v8  }
 0x376   :  { %1255 = vset.pattern.permute.xlu1 %v1368_v2 }
 0x377   :  { %995 = vperm.xlu0 %1256, %v1758_v10  }
 0x37f   :  { %1259 = vset.pattern.permute.xlu0 %v1478_v45 }
 0x385   :  { %1250 = vperm.xlu2 %1248, %v1249_v55  }
 0x38d   :  { %1254 = vset.pattern.permute.xlu2 %v1368_v2 }
 0x38e   :  { %974 = vperm.xlu2 %1254, %v1768_v17  }
 0x396   :  { %980 = vperm.xlu2 %1254, %v1779_v20  }
 0x398   :  { %1056 = vmax.xlane.f32.xlu1 %v1055_v42 }
 0x39e   :  { %986 = vperm.xlu2 %1254, %v1785_v22  }
 0x3a6   :  { %989 = vperm.xlu2 %1254, %v1790_v24  }
 0x3ae   :  { %1258 = vset.pattern.permute.xlu2 %v1478_v45 }
 0x3b1   :  { %977 = vperm.xlu1 %1255, %v1796_v28  }
 0x3b9   :  { %992 = vperm.xlu1 %1255, %v1799_v32  }
 0x3c1   :  { %1257 = vset.pattern.permute.xlu1 %v1478_v45 }
 0x3d8   :  { %v1234_v25 = vpop.permute.xlu1 %1233  ;;  %v1245_v34 = vpop.permute.xlu0 %1244 }
 0x3d9   :  { %v1236_v39 = vunpack.i.h.bf16 %v1234_v25  ;;  %v1235_v36 = vunpack.i.l.bf16 %v1234_v25  ;;  %v1247_v38 = vunpack.i.h.bf16 %v1245_v34  ;;  %v1246_v48 = vunpack.i.l.bf16 %v1245_v34 }
 0x3db   :  { %v568_v44 = vmul.f32 %v1333_v46, %v1236_v39  ;;  %v567_v40 = vmul.f32 %v1334_v47, %v1235_v36  ;;  %v572_v45 = vmul.f32 %v1247_v38, %v1419_v26  ;;  %v571_v50 = vmul.f32 %v1335_v52, %v1246_v48 }
 0x3dd   :  { %v583_v56 = vsel %vm575_vm14, %v568_v44, 0.0  ;;  %v576_v59 = vsel %vm575_vm14, %v567_v40, 0.0  ;;  %v611_v60 = vsel %vm575_vm14, %v572_v45, 0.0  ;;  %v604_v61 = vsel %vm575_vm14, %v571_v50, 0.0  ;;  %v1338_v50 = vld [vmem:[%s2089_s0 + $0x1c] sm:$0xf] }
 0x3de   :  { %v584_v54 = vrot.slane %v583_v56, 4  ;;  %v577_v63 = vrot.slane %v576_v59, 4  ;;  %v612_v62 = vrot.slane %v611_v60, 4  ;;  %v605_v57 = vrot.slane %v604_v61, 4 }
 0x3e0   :  { %v585_v0 = vadd.f32 %v584_v54, %v583_v56  ;;  %v578_v26 = vadd.f32 %v577_v63, %v576_v59  ;;  %v613_v1 = vadd.f32 %v612_v62, %v611_v60  ;;  %v606_v35 = vadd.f32 %v605_v57, %v604_v61  ;;  %v1239_v58 = vpop.permute.xlu1 %1238  ;;  %v500_v6 = vpop.xlane.xlu2 %499  ;;  %v1339_v60 = vld [vmem:[%s2089_s0 + $0x18] sm:$0xf]  ;;  %s1370_s0 = smov 104  }
 0x3e1   :  { %v1241_v3 = vunpack.i.h.bf16 %v1239_v58  ;;  %v1240_v5 = vunpack.i.l.bf16 %v1239_v58  ;;  %v501_v51 = vcvt.f32.s32 %v500_v6 }
 0x3e2   :  { %v586_v12 = vrot.slane %v585_v0, 2  ;;  %v579_v43 = vrot.slane %v578_v26, 2  ;;  %v614_v13 = vrot.slane %v613_v1, 2  ;;  %v607_v55 = vrot.slane %v606_v35, 2 }
 0x3e3   :  { %v570_v4 = vmul.f32 %v1336_v15, %v1241_v3  ;;  %v569_v14 = vmul.f32 %v1337_v11, %v1240_v5  ;;  %v504_v16 = vadd.s32 %v503_v53, %v501_v51 }
 0x3e4   :  { %v587_v29 = vadd.f32 %v586_v12, %v585_v0  ;;  %v580_v19 = vadd.f32 %v579_v43, %v578_v26  ;;  %v615_v33 = vadd.f32 %v614_v13, %v613_v1  ;;  %v608_v42 = vadd.f32 %v607_v55, %v606_v35 }
 0x3e5   :  { %v597_v21 = vsel %vm575_vm14, %v570_v4, 0.0  ;;  %v590_v37 = vsel %vm575_vm14, %v569_v14, 0.0  ;;  %508 = vst.msk [vmem:[%s2093_s4] sm:$0xff] %vm507_vm15, %v504_v16 }
 0x3e6   :  { %v588_v7 = vrot.slane %v587_v29, 1  ;;  %v581_v23 = vrot.slane %v580_v19, 1  ;;  %v609_v27 = vrot.slane %v608_v42, 1  ;;  %v598_v30 = vrot.slane %v597_v21, 4 }
 0x3e7   :  { %v591_v49 = vrot.slane %v590_v37, 4  ;;  %v616_v34 = vrot.slane %v615_v33, 1 }
 0x3e8   :  { %v589_v31 = vadd.f32 %v588_v7, %v587_v29  ;;  %v582_v25 = vadd.f32 %v581_v23, %v580_v19  ;;  %v1251_v39 = vpop.permute.xlu2 %1250  ;;  %v599_v36 = vadd.f32 %v598_v30, %v597_v21  ;;  %v1837_v40 = vadd.f32 %v609_v27, %v608_v42 }
 0x3e9   :  { %v592_v38 = vadd.f32 %v591_v49, %v590_v37  ;;  %v1253_v48 = vunpack.i.h.bf16 %v1251_v39  ;;  %v1252_v41 = vunpack.i.l.bf16 %v1251_v39  ;;  %v1843_v59 = vadd.f32 %v616_v34, %v615_v33 }
 0x3ea   :  { %v1830_v46 = vmax.f32 %v589_v31, 1e-06  ;;  %v1832_v44 = vmax.f32 %v582_v25, 1e-06  ;;  %v1835_v47 = vsel %vm279_vm3, %v589_v31, %v582_v25  ;;  %v600_v45 = vrot.slane %v599_v36, 2 }
 0x3eb   :  { %v593_v52 = vrot.slane %v592_v38, 2  ;;  %v574_v56 = vmul.f32 %v1338_v50, %v1253_v48  ;;  %v573_v61 = vmul.f32 %v1339_v60, %v1252_v41  ;;  %v1851_v57 = vmax.f32 %v1837_v40, 1e-06 }
 0x3ec   :  { %1295 = vrcp.f32 %v1830_v46  ;;  %v601_v54 = vadd.f32 %v600_v45, %v599_v36  ;;  %v1855_v58 = vmax.f32 %v1843_v59, 1e-06  ;;  %v649_v12 = vand.u32 2147483647, %v1832_v44 }
 0x3ed   :  { %1297 = vrcp.f32 %v1832_v44  ;;  %v594_v63 = vadd.f32 %v593_v52, %v592_v38  ;;  %v625_v62 = vsel %vm575_vm14, %v574_v56, 0.0  ;;  %v618_v0 = vsel %vm575_vm14, %v573_v61, 0.0 }
 0x3ee   :  { %v626_v53 = vrot.slane %v625_v62, 4  ;;  %v602_v26 = vrot.slane %v601_v54, 1  ;;  %v619_v35 = vrot.slane %v618_v0, 4  ;;  %1299 = vrcp.f32 %v1851_v57 }
 0x3ef   :  { %v595_v1 = vrot.slane %v594_v63, 1  ;;  %vm645_vm1 = vweird.f32 %v1832_v44  ;;  %1301 = vrcp.f32 %v1855_v58  ;;  %v651_v19 = vand.u32 2147483648, %v1832_v44 }
 0x3f0   :  { %v627_v6 = vadd.f32 %v626_v53, %v625_v62  ;;  %v1857_v3 = vadd.f32 %v602_v26, %v601_v54  ;;  %v620_v51 = vadd.f32 %v619_v35, %v618_v0  ;;  %vm1875_vm2 = vcmp.eq.f32.partialorder %v649_v12, 8.507059e+37 }
 0x3f1   :  { %v1859_v5 = vadd.f32 %v595_v1, %v594_v63  ;;  %v663_v37 = vand.u32 2147483647, %v1830_v46  ;;  %v665_v27 = vand.u32 2147483648, %v1830_v46  ;;  %vm659_vm10 = vweird.f32 %v1830_v46 }
 0x3f2   :  { %v1296_v43 = vpop.eup %1295  ;;  %v628_v13 = vrot.slane %v627_v6, 2  ;;  %v1865_v15 = vmax.f32 %v1857_v3, 1e-06  ;;  %v621_v11 = vrot.slane %v620_v51, 2  ;;  %v652_v39 = vor.u32 1.1754944e-38, %v651_v19 }
 0x3f3   :  { %v1298_v55 = vpop.eup %1297  ;;  %v1868_v4 = vmax.f32 %v1859_v5, 1e-06  ;;  %v655_v14 = vmul.f32 %v1296_v43, %v1830_v46  ;;  %vm660_vm11 = vweird.f32 %v1296_v43  ;;  %vm1889_vm13 = vcmp.eq.f32.partialorder %v663_v37, 8.507059e+37 }
 0x3f4   :  { %v629_v16 = vadd.f32 %v628_v13, %v627_v6  ;;  %v641_v29 = vmul.f32 %v1298_v55, %v1832_v44  ;;  %1303 = vrcp.f32 %v1865_v15  ;;  %v622_v33 = vadd.f32 %v621_v11, %v620_v51  ;;  %v1883_v31 = vpop.eup %1299  ;;  %vm1899_vm14 = vmor %vm659_vm10, %vm660_vm11 }
 0x3f5   :  { %v656_v21 = vsub.f32 1.0, %v655_v14  ;;  %1305 = vrcp.f32 %v1868_v4  ;;  %vm646_vm12 = vweird.f32 %v1298_v55  ;;  %v679_v41 = vand.u32 2147483648, %v1868_v4  ;;  %v1894_v45 = vpop.eup %1301 }
 0x3f6   :  { %v630_v7 = vrot.slane %v629_v16, 1  ;;  %v642_v23 = vsub.f32 1.0, %v641_v29  ;;  %v623_v30 = vrot.slane %v622_v33, 1  ;;  %v666_v60 = vor.u32 1.1754944e-38, %v665_v27  ;;  %vm647_vm15 = vmor %vm645_vm1, %vm646_vm12 }
 0x3f7   :  { %v657_v49 = vmul.f32 %v1296_v43, %v656_v21  ;;  %v677_v61 = vand.u32 2147483647, %v1868_v4  ;;  %vm673_vm9 = vweird.f32 %v1868_v4  ;;  %v697_v53 = vmul.f32 %v1883_v31, %v1851_v57 }
 0x3f8   :  { %v1885_v25 = vadd.f32 %v630_v7, %v629_v16  ;;  %v643_v34 = vmul.f32 %v1298_v55, %v642_v23  ;;  %v1887_v36 = vadd.f32 %v623_v30, %v622_v33  ;;  %v691_v35 = vand.u32 2147483647, %v1865_v15 }
 0x3f9   :  { %v658_v38 = vadd.f32 %v1296_v43, %v657_v49  ;;  %v693_v6 = vand.u32 2147483648, %v1865_v15  ;;  %v680_v12 = vor.u32 1.1754944e-38, %v679_v41  ;;  %vm687_vm1 = vweird.f32 %v1865_v15 }
 0x3fa   :  { %v1897_v52 = vmax.f32 %v1885_v25, 1e-06  ;;  %v644_v50 = vadd.f32 %v1298_v55, %v643_v34  ;;  %v1304_v54 = vpop.eup %1303  ;;  %v1905_v63 = vmax.f32 %v1887_v36, 1e-06  ;;  %vm1927_vm10 = vcmp.eq.f32.partialorder %v677_v61, 8.507059e+37 }
 0x3fb   :  { %v662_v62 = vsel %vm1899_vm14, %v1296_v43, %v658_v38  ;;  %v1306_v0 = vpop.eup %1305  ;;  %v683_v1 = vmul.f32 %v1304_v54, %v1865_v15  ;;  %vm688_vm12 = vweird.f32 %v1304_v54  ;;  %v698_v16 = vsub.f32 1.0, %v697_v53 }
 0x3fc   :  { %v648_v26 = vsel %vm647_vm15, %v1298_v55, %v644_v50  ;;  %1307 = vrcp.f32 %v1905_v63  ;;  %v669_v51 = vmul.f32 %v1306_v0, %v1868_v4  ;;  %v667_v13 = vsel %vm1889_vm13, %v666_v60, %v662_v62  ;;  %vm689_vm8 = vmor %vm687_vm1, %vm688_vm12 }
 0x3fd   :  { %1309 = vrcp.f32 %v1897_v52  ;;  %v1923_v43 = vsel %vm1875_vm2, %v652_v39, %v648_v26  ;;  %v684_v11 = vsub.f32 1.0, %v683_v1  ;;  %vm674_vm11 = vweird.f32 %v1306_v0 }
 0x3fe   :  { %v670_v14 = vsub.f32 1.0, %v669_v51  ;;  %vm1931_vm14 = vcmp.eq.f32.partialorder %v691_v35, 8.507059e+37  ;;  %v694_v33 = vor.u32 1.1754944e-38, %v693_v6  ;;  %v711_v42 = vmul.f32 %v1894_v45, %v1855_v58  ;;  %vm1942_vm13 = vmor %vm673_vm9, %vm674_vm11 }
 0x3ff   :  { %v685_v29 = vmul.f32 %v1304_v54, %v684_v11  ;;  %v699_v37 = vmul.f32 %v1883_v31, %v698_v16  ;;  %vm702_vm2 = vweird.f32 %v1883_v31  ;;  %v707_v7 = vand.u32 2147483648, %v1851_v57 }
 0x400   :  { %v671_v21 = vmul.f32 %v1306_v0, %v670_v14  ;;  %vm701_vm15 = vweird.f32 %v1851_v57  ;;  %v705_v30 = vand.u32 2147483647, %v1851_v57  ;;  %v712_v49 = vsub.f32 1.0, %v711_v42 }
 0x401   :  { %v686_v27 = vadd.f32 %v1304_v54, %v685_v29  ;;  %v700_v38 = vadd.f32 %v1883_v31, %v699_v37  ;;  %vm716_vm7 = vweird.f32 %v1894_v45  ;;  %v719_v48 = vand.u32 2147483647, %v1855_v58  ;;  %vm703_vm9 = vmor %vm701_vm15, %vm702_vm2 }
 0x402   :  { %v1308_v34 = vpop.eup %1307  ;;  %v672_v39 = vadd.f32 %v1306_v0, %v671_v21  ;;  %v713_v56 = vmul.f32 %v1894_v45, %v712_v49  ;;  %v721_v60 = vand.u32 2147483648, %v1855_v58  ;;  %v708_v26 = vor.u32 1.1754944e-38, %v707_v7 }
 0x403   :  { %v1310_v41 = vpop.eup %1309  ;;  %v690_v50 = vsel %vm689_vm8, %v1304_v54, %v686_v27  ;;  %v725_v61 = vmul.f32 %v1308_v34, %v1905_v63  ;;  %v704_v53 = vsel %vm703_vm9, %v1883_v31, %v700_v38  ;;  %vm715_vm1 = vweird.f32 %v1855_v58 }
 0x404   :  { %v676_v62 = vsel %vm1942_vm13, %v1306_v0, %v672_v39  ;;  %v695_v54 = vsel %vm1931_vm14, %v694_v33, %v690_v50  ;;  %vm706_vm8 = vcmp.eq.f32.partialorder %v705_v30, 8.507059e+37  ;;  %v714_v1 = vadd.f32 %v1894_v45, %v713_v56  ;;  %vm717_vm12 = vmor %vm715_vm1, %vm716_vm7 }
 0x405   :  { %vm720_vm11 = vcmp.eq.f32.partialorder %v719_v48, 8.507059e+37  ;;  %v681_v35 = vsel %vm1927_vm10, %v680_v12, %v676_v62  ;;  %v709_v6 = vsel %vm706_vm8, %v708_v26, %v704_v53  ;;  %v722_v0 = vor.u32 1.1754944e-38, %v721_v60  ;;  %v975_v12 = vpop.permute.xlu2 %974 }
 0x406   :  { %v726_v51 = vsub.f32 1.0, %v725_v61  ;;  %v718_v31 = vsel %vm717_vm12, %v1894_v45, %v714_v1  ;;  %vm729_vm2 = vweird.f32 %v1905_v63  ;;  %v735_v11 = vand.u32 2147483648, %v1905_v63 }
 0x407   :  { %v739_v14 = vmul.f32 %v1310_v41, %v1897_v52  ;;  %vm730_vm14 = vweird.f32 %v1308_v34  ;;  %v733_v29 = vand.u32 2147483647, %v1905_v63  ;;  %vm743_vm10 = vweird.f32 %v1897_v52 }
 0x408   :  { %v727_v16 = vmul.f32 %v1308_v34, %v726_v51  ;;  %v723_v55 = vsel %vm720_vm11, %v722_v0, %v718_v31  ;;  %v736_v19 = vor.u32 1.1754944e-38, %v735_v11  ;;  %v747_v42 = vand.u32 2147483647, %v1897_v52  ;;  %vm731_vm7 = vmor %vm729_vm2, %vm730_vm14 }
 0x409   :  { %v740_v33 = vsub.f32 1.0, %v739_v14  ;;  %v749_v37 = vand.u32 2147483648, %v1897_v52  ;;  %v802_v7 = vsel %vm279_vm3, %v667_v13, %v1923_v43  ;;  %v785_v23 = vsel %vm281_vm0, %v1859_v5, %v1835_v47 }
 0x40a   :  { %v728_v45 = vadd.f32 %v1308_v34, %v727_v16  ;;  %vm744_vm13 = vweird.f32 %v1310_v41  ;;  %v803_v49 = vsel %vm281_vm0, %v681_v35, %v802_v7  ;;  %vm734_vm15 = vcmp.eq.f32.partialorder %v733_v29, 8.507059e+37  ;;  %v984_v35 = vpop.permute.xlu0 %983 }
 0x40b   :  { %v1057_v21 = vpop.xlane.xlu1 %1056  ;;  %v741_v30 = vmul.f32 %v1310_v41, %v740_v33  ;;  %v804_v38 = vsel %vm283_vm4, %v695_v54, %v803_v49  ;;  %v786_v43 = vsel %vm283_vm4, %v1857_v3, %v785_v23  ;;  %vm745_vm9 = vmor %vm743_vm10, %vm744_vm13  ;;  %vm748_vm1 = vcmp.eq.f32.partialorder %v747_v42, 8.507059e+37 }
 0x40c   :  { %v1058_v27 = vsub.f32 %v1776_v18, %v1057_v21  ;;  %v732_v39 = vsel %vm731_vm7, %v1308_v34, %v728_v45  ;;  %v805_v47 = vsel %vm285_vm5, %v709_v6, %v804_v38  ;;  %v750_v18 = vor.u32 1.1754944e-38, %v749_v37 }
 0x40d   :  { %v737_v48 = vsel %vm734_vm15, %v736_v19, %v732_v39  ;;  %v742_v50 = vadd.f32 %v1310_v41, %v741_v30  ;;  %v806_v5 = vsel %vm287_vm6, %v723_v55, %v805_v47  ;;  %v787_v34 = vsel %vm285_vm5, %v1837_v40, %v786_v43  ;;  %v981_v54 = vpop.permute.xlu2 %980 }
 0x40e   :  { %v1059_v13 = vmul.f32 1.442695, %v1058_v27  ;;  %vm2109_vm8 = vcmask 1046534   ;;  %v788_v3 = vsel %vm287_vm6, %v1843_v59, %v787_v34  ;;  %vm2111_vm12 = vcmask 1047559  }
 0x40f   :  { %v746_v56 = vsel %vm745_vm9, %v1310_v41, %v742_v50  ;;  %v807_v60 = vsel %vm2109_vm8, %v737_v48, %v806_v5  ;;  %vm2110_vm11 = vmmov %vm2109_vm8  ;;  %vm2113_vm14 = vcmask 31744   ;;  %v997_v0 = vperm.slane %v975_v12, %v1452_v9 }
 0x410   :  { %1311 = vpow2.f32 %v1059_v13  ;;  %v751_v61 = vsel %vm748_vm1, %v750_v18, %v746_v56  ;;  %v789_v62 = vsel %vm2110_vm11, %v1887_v36, %v788_v3  ;;  %vm2112_vm2 = vmmov %vm2111_vm12  ;;  %v999_v51 = vperm.slane %v981_v54, %v1452_v9 }
 0x411   :  { %v808_v53 = vsel %vm2111_vm12, %v751_v61, %v807_v60  ;;  %v790_v26 = vsel %vm2112_vm2, %v1885_v25, %v789_v62  ;;  %v1000_v36 = vperm.slane %v984_v35, %v1452_v9  ;;  %vm2114_vm10 = vmmov %vm2109_vm8  ;;  %v1340_v60 = vld [vmem:[%s2090_s1] sm:$0xff]  ;;  %s1372_s1 = smov [#allocation2]  }
 0x412   :  { %v996_v29 = vpop.permute.xlu0 %995  ;;  %vm2115_vm7 = vmmov %vm2112_vm2  ;;  %v792_v3 = vsub.f32 %v1340_v60, %v790_v26  ;;  %v755_v60 = vmul.f32 2.0, %v1865_v15  ;;  %s1206_s29 = sshll.u32 %s1372_s1, 4  ;;  %s1207_s29 = int_to_ptr.vmem [resolvable:$true] %s1206_s29 }
 0x413   :  { %v1004_v42 = vperm.slane %v996_v29, %v1452_v9  ;;  %vm2116_vm13 = vmmov %vm2113_vm14 }
 0x414   :  { %v793_v62 = vand.u32 2147483647, %v792_v3  ;;  %v754_v3 = vmul.f32 2.0, %v1868_v4  ;;  %vm2117_vm11 = vmmov %vm2114_vm10 }
 0x415   :  { %v987_v41 = vpop.permute.xlu2 %986  ;;  %vm2118_vm12 = vmmov %vm2112_vm2 }
 0x416   :  { %v1312_v1 = vpop.eup %1311  ;;  %v1001_v11 = vperm.slane %v987_v41, %v1452_v9 }
 0x417   :  { %v1061_v40 = vsel %vm2113_vm14, %v1312_v1, 0.0 }
 0x418   :  { %1062 = vadd.xlane.f32.xlu2 %v1061_v40 }
 0x41d   :  { %v990_v14 = vpop.permute.xlu2 %989 }
 0x41e   :  { %v1002_v12 = vperm.slane %v990_v14, %v1452_v9 }
 0x423   :  { %v978_v6 = vpop.permute.xlu1 %977 }
 0x424   :  { %v998_v59 = vperm.slane %v978_v6, %v1452_v9 }
 0x426   :  { %v1005_v31 = vsel %vm279_vm3, %v998_v59, %v997_v0 }
 0x427   :  { %v1006_v25 = vsel %vm281_vm0, %v999_v51, %v1005_v31 }
 0x428   :  { %v1007_v16 = vsel %vm283_vm4, %v1000_v36, %v1006_v25 }
 0x429   :  { %v1008_v55 = vsel %vm285_vm5, %v1001_v11, %v1007_v16 }
 0x42a   :  { %v1009_v21 = vsel %vm287_vm6, %v1002_v12, %v1008_v55 }
 0x42b   :  { %v993_v19 = vpop.permute.xlu1 %992 }
 0x42c   :  { %v1003_v33 = vperm.slane %v993_v19, %v1452_v9 }
 0x42e   :  { %v1010_v45 = vsel %vm2114_vm10, %v1003_v33, %v1009_v21 }
 0x42f   :  { %v1011_v37 = vsel %vm2115_vm7, %v1004_v42, %v1010_v45 }
 0x430   :  { %v1013_v7 = vsel %vm2116_vm13, %v1011_v37, 0.0 }
 0x431   :  { %1014 = vadd.xlane.f32.xlu0 %v1013_v7 }
 0x48b   :  { %v1063_v23 = vpop.xlane.xlu2 %1062 }
 0x48c   :  { %1313 = vlog2.f32 %v1063_v23 }
 0x492   :  { %v1314_v30 = vpop.eup %1313 }
 0x493   :  { %v1065_v49 = vmul.f32 0.6931472, %v1314_v30 }
 0x495   :  { %v1066_v39 = vsub.f32 %v1058_v27, %v1065_v49 }
 0x497   :  { %v1082_v38 = vperm.slane %v1066_v39, 2  ;;  %v1068_v43 = vperm.slane %v1066_v39, 0  ;;  %v1096_v13 = vperm.slane %v1066_v39, 4  ;;  %v1075_v48 = vperm.slane %v1066_v39, 1 }
 0x498   :  { %v1089_v50 = vperm.slane %v1066_v39, 3  ;;  %v1103_v47 = vperm.slane %v1066_v39, 5  ;;  %v1117_v31 = vperm.slane %v1066_v39, 7  ;;  %v1110_v55 = vperm.slane %v1066_v39, 6 }
 0x499   :  { %1087 = vperm.xlu2 %1258, %v1082_v38   ;;  %1073 = vperm.xlu1 %1257, %v1068_v43  }
 0x4a1   :  { %1101 = vperm.xlu2 %1258, %v1096_v13   ;;  %1080 = vperm.xlu1 %1257, %v1075_v48  }
 0x4a4   :  { %v1015_v18 = vpop.xlane.xlu0 %1014 }
 0x4a5   :  { %1315 = vrcp.f32 %v1015_v18  ;;  %v1027_v6 = vand.u32 2147483648, %v1015_v18  ;;  %vm1021_vm9 = vweird.f32 %v1015_v18  ;;  %v1025_v0 = vand.u32 2147483647, %v1015_v18 }
 0x4a7   :  { %v1028_v59 = vor.u32 1.1754944e-38, %v1027_v6  ;;  %vm1026_vm8 = vcmp.eq.f32.partialorder %v1025_v0, 8.507059e+37 }
 0x4a9   :  { %809 = vrot.lane.b32.xlu1 %v808_v53, %s1370_s0 }
 0x4ab   :  { %v1316_v5 = vpop.eup %1315 }
 0x4ac   :  { %v1017_v34 = vmul.f32 %v1316_v5, %v1015_v18  ;;  %vm1022_vm15 = vweird.f32 %v1316_v5 }
 0x4ad   :  { %vm1023_vm1 = vmor %vm1021_vm9, %vm1022_vm15 }
 0x4ae   :  { %v1018_v61 = vsub.f32 1.0, %v1017_v34  ;;  %v753_v34 = vmul.f32 2.0, %v1830_v46 }
 0x4b0   :  { %v1019_v53 = vmul.f32 %v1316_v5, %v1018_v61  ;;  %1317 = vlog2.f32 %v753_v34 }
 0x4b1   :  { %1094 = vperm.xlu1 %1257, %v1089_v50  }
 0x4b2   :  { %v1020_v35 = vadd.f32 %v1316_v5, %v1019_v53  ;;  %v758_v53 = vmul.f32 2.0, %v1905_v63 }
 0x4b4   :  { %v1024_v26 = vsel %vm1023_vm1, %v1316_v5, %v1020_v35 }
 0x4b5   :  { %v2029_v36 = vsel %vm1026_vm8, %v1028_v59, %v1024_v26 }
 0x4b6   :  { %v1032_v11 = vperm.slane %v2029_v36, 1  ;;  %v1033_v19 = vperm.slane %v2029_v36, 2  ;;  %v1035_v33 = vperm.slane %v2029_v36, 4  ;;  %v1031_v30 = vperm.slane %v2029_v36, 0  ;;  %v1318_v61 = vpop.eup %1317 }
 0x4b7   :  { %v1036_v13 = vperm.slane %v2029_v36, 5  ;;  %v1038_v18 = vperm.slane %v2029_v36, 7  ;;  %v1037_v26 = vperm.slane %v2029_v36, 6 }
 0x4b8   :  { %v1048_v29 = vmul.f32 %v1796_v28, %v1032_v11  ;;  %v1049_v45 = vmul.f32 %v1779_v20, %v1033_v19  ;;  %v1051_v37 = vmul.f32 %v1785_v22, %v1035_v33  ;;  %v1047_v49 = vmul.f32 %v1768_v17, %v1031_v30 }
 0x4b9   :  { %1108 = vperm.xlu1 %1257, %v1103_v47   ;;  %v1034_v20 = vperm.slane %v2029_v36, 3  ;;  %v1052_v48 = vmul.f32 %v1790_v24, %v1036_v13  ;;  %v1054_v17 = vmul.f32 %v1758_v10, %v1038_v18  ;;  %v763_v10 = vmul.f32 0.6931472, %v1318_v61 }
 0x4bb   :  { %v1050_v38 = vmul.f32 %v1754_v8, %v1034_v20  ;;  %v752_v8 = vmul.f32 2.0, %v1832_v44  ;;  %v757_v44 = vmul.f32 2.0, %v1855_v58  ;;  %v1053_v58 = vmul.f32 %v1799_v32, %v1037_v26 }
 0x4bd   :  { %1319 = vlog2.f32 %v752_v8 }
 0x4be   :  { %1321 = vlog2.f32 %v755_v60 }
 0x4bf   :  { %1323 = vlog2.f32 %v754_v3 }
 0x4c0   :  { %1325 = vlog2.f32 %v758_v53 }
 0x4c1   :  { %1260 = vset.pattern.permute.xlu1 %v1368_v2  ;;  %1327 = vlog2.f32 %v757_v44 }
 0x4f3   :  { %v1088_v14 = vpop.permute.xlu2 %1087 }
 0x4f4   :  { %v1134_v28 = vmul.f32 %v1088_v14, %v1049_v45  ;;  %v759_v14 = vmul.f32 2.0, %v1897_v52 }
 0x4fb   :  { %v1102_v42 = vpop.permute.xlu2 %1101 }
 0x4fc   :  { %v1136_v7 = vmul.f32 %v1102_v42, %v1051_v37 }
 0x50b   :  { %v1074_v27 = vpop.permute.xlu1 %1073 }
 0x50c   :  { %v1132_v39 = vmul.f32 %v1074_v27, %v1047_v49 }
 0x513   :  { %v1081_v56 = vpop.permute.xlu1 %1080 }
 0x514   :  { %v1133_v12 = vmul.f32 %v1081_v56, %v1048_v29 }
 0x51b   :  { %v810_v54 = vpop.permute.xlu1 %809 }
 0x51c   :  { %v812_v1 = vmul.f32 %v810_v54, %v793_v62  ;;  %v1320_v62 = vpop.eup %1319 }
 0x51d   :  { %v1322_v35 = vpop.eup %1321 }
 0x51e   :  { %821 = vrot.lane.b32.xlu1 %v812_v1, %s1371_s28  ;;  %v819_v40 = vrot.slane %v812_v1, 6  ;;  %v816_v41 = vrot.slane %v812_v1, 3  ;;  %v814_v51 = vrot.slane %v812_v1, 1  ;;  %v818_v25 = vrot.slane %v812_v1, 5  ;;  %v1324_v0 = vpop.eup %1323 }
 0x51f   :  { %v815_v16 = vrot.slane %v812_v1, 2  ;;  %v817_v21 = vrot.slane %v812_v1, 4  ;;  %v820_v23 = vrot.slane %v812_v1, 7  ;;  %v761_v1 = vmul.f32 0.6931472, %v1320_v62  ;;  %v1326_v11 = vpop.eup %1325 }
 0x520   :  { %833 = vrot.lane.b32.xlu2 %v819_v40, %s1371_s28  ;;  %827 = vrot.lane.b32.xlu0 %v816_v41, %s1371_s28  ;;  %v756_v41 = vmul.f32 2.0, %v1851_v57  ;;  %v767_v59 = vmul.f32 0.6931472, %v1322_v35  ;;  %v765_v63 = vmul.f32 0.6931472, %v1324_v0 }
 0x522   :  { %1329 = vlog2.f32 %v756_v41 }
 0x523   :  { %v1095_v22 = vpop.permute.xlu1 %1094  ;;  %1331 = vlog2.f32 %v759_v14 }
 0x524   :  { %v1135_v43 = vmul.f32 %v1095_v22, %v1050_v38 }
 0x526   :  { %823 = vrot.lane.b32.xlu1 %v814_v51, %s1371_s28 }
 0x528   :  { %1122 = vperm.xlu2 %1258, %v1117_v31   ;;  %831 = vrot.lane.b32.xlu0 %v818_v25, %s1371_s28 }
 0x52e   :  { %825 = vrot.lane.b32.xlu1 %v815_v16, %s1371_s28  ;;  %v1328_v16 = vpop.eup %1327 }
 0x52f   :  { %v771_v36 = vmul.f32 0.6931472, %v1328_v16 }
 0x530   :  { %1261 = vset.pattern.permute.xlu2 %v1368_v2  ;;  %1115 = vperm.xlu0 %1259, %v1110_v55  }
 0x531   :  { %1152 = vperm.xlu2 %1261, %v1133_v12   ;;  %v1330_v12 = vpop.eup %1329 }
 0x532   :  { %v769_v45 = vmul.f32 0.6931472, %v1330_v12  ;;  %v1332_v52 = vpop.eup %1331 }
 0x533   :  { %v775_v22 = vmul.f32 0.6931472, %v1332_v52 }
 0x536   :  { %829 = vrot.lane.b32.xlu1 %v817_v21, %s1371_s28  ;;  %v773_v21 = vmul.f32 0.6931472, %v1326_v11 }
 0x538   :  { %1262 = vset.pattern.permute.xlu0 %v1368_v2  ;;  %v1109_v2 = vpop.permute.xlu1 %1108 }
 0x539   :  { %1161 = vperm.xlu2 %1261, %v1136_v7   ;;  %1155 = vperm.xlu0 %1262, %v1134_v28   ;;  %v1137_v50 = vmul.f32 %v1109_v2, %v1052_v48 }
 0x53e   :  { %835 = vrot.lane.b32.xlu1 %v820_v23, %s1371_s28 }
 0x546   :  { %1149 = vperm.xlu1 %1260, %v1132_v39  }
 0x54e   :  { %1158 = vperm.xlu1 %1260, %v1135_v43  }
 0x556   :  { %1164 = vperm.xlu1 %1260, %v1137_v50  }
 0x57a   :  { %v834_v47 = vpop.permute.xlu2 %833 }
 0x57b   :  { %v851_v28 = vadd.f32 %v834_v47, %v773_v21 }
 0x57d   :  { %v871_v49 = vrot.slane %v851_v28, 2 }
 0x582   :  { %v1123_v27 = vpop.permute.xlu2 %1122 }
 0x583   :  { %v1139_v5 = vmul.f32 %v1123_v27, %v1054_v17 }
 0x585   :  { %1170 = vperm.xlu0 %1262, %v1139_v5  }
 0x58b   :  { %v1153_v47 = vpop.permute.xlu2 %1152 }
 0x58c   :  { %v1173_v5 = vperm.slane %v1153_v47, %v1452_v9 }
 0x590   :  { %v822_v56 = vpop.permute.xlu1 %821 }
 0x591   :  { %v845_v15 = vadd.f32 %v822_v56, %v761_v1 }
 0x592   :  { %v828_v24 = vpop.permute.xlu0 %827 }
 0x593   :  { %v848_v51 = vadd.f32 %v828_v24, %v767_v59  ;;  %v1162_v34 = vpop.permute.xlu2 %1161 }
 0x595   :  { %v865_v19 = vrot.slane %v848_v51, 5 }
 0x598   :  { %v824_v54 = vpop.permute.xlu1 %823 }
 0x599   :  { %v846_v46 = vadd.f32 %v824_v54, %v763_v10  ;;  %v1176_v10 = vperm.slane %v1162_v34, %v1452_v9 }
 0x59a   :  { %v832_v40 = vpop.permute.xlu0 %831 }
 0x59b   :  { %v861_v6 = vrot.slane %v846_v46, 7  ;;  %v850_v37 = vadd.f32 %v832_v40, %v771_v36 }
 0x59d   :  { %v862_v4 = vsel %vm279_vm3, %v861_v6, %v845_v15  ;;  %v869_v30 = vrot.slane %v850_v37, 3 }
 0x5a0   :  { %v826_v31 = vpop.permute.xlu1 %825 }
 0x5a1   :  { %v847_v25 = vadd.f32 %v826_v31, %v765_v63 }
 0x5a2   :  { %v1116_v57 = vpop.permute.xlu0 %1115 }
 0x5a3   :  { %v863_v29 = vrot.slane %v847_v25, 6  ;;  %v1138_v55 = vmul.f32 %v1116_v57, %v1053_v58 }
 0x5a5   :  { %v864_v33 = vsel %vm281_vm0, %v863_v29, %v862_v4  ;;  %1167 = vperm.xlu2 %1261, %v1138_v55  }
 0x5a6   :  { %v866_v42 = vsel %vm283_vm4, %v865_v19, %v864_v33 }
 0x5a8   :  { %v830_v32 = vpop.permute.xlu1 %829 }
 0x5a9   :  { %v849_v7 = vadd.f32 %v830_v32, %v769_v45 }
 0x5ab   :  { %v867_v23 = vrot.slane %v849_v7, 4  ;;  %v1156_v27 = vpop.permute.xlu0 %1155 }
 0x5ac   :  { %v1174_v60 = vperm.slane %v1156_v27, %v1452_v9 }
 0x5ad   :  { %v868_v39 = vsel %vm285_vm5, %v867_v23, %v866_v42 }
 0x5ae   :  { %v870_v20 = vsel %vm287_vm6, %v869_v30, %v868_v39 }
 0x5af   :  { %v872_v38 = vsel %vm2117_vm11, %v871_v49, %v870_v20 }
 0x5b0   :  { %v836_v43 = vpop.permute.xlu1 %835 }
 0x5b1   :  { %v852_v13 = vadd.f32 %v836_v43, %v775_v22 }
 0x5b3   :  { %v873_v2 = vrot.slane %v852_v13, 1 }
 0x5b5   :  { %v874_v48 = vsel %vm2118_vm12, %v873_v2, %v872_v38 }
 0x5b6   :  { %875 = vrot.lane.b32.xlu1 %v874_v48, %s1370_s0 }
 0x5b8   :  { %v1150_v50 = vpop.permute.xlu1 %1149 }
 0x5b9   :  { %v1172_v17 = vperm.slane %v1150_v50, %v1452_v9 }
 0x5bb   :  { %v1180_v8 = vsel %vm279_vm3, %v1173_v5, %v1172_v17  ;;  %vm2119_vm3 = vmmov %vm2114_vm10 }
 0x5bc   :  { %v1181_v3 = vsel %vm281_vm0, %v1174_v60, %v1180_v8  ;;  %vm2120_vm0 = vmmov %vm2116_vm13 }
 0x5c0   :  { %v1159_v18 = vpop.permute.xlu1 %1158 }
 0x5c1   :  { %v1175_v56 = vperm.slane %v1159_v18, %v1452_v9 }
 0x5c3   :  { %v1182_v61 = vsel %vm283_vm4, %v1175_v56, %v1181_v3  ;;  %vm878_vm4 = vcmask 195584  }
 0x5c4   :  { %v1183_v1 = vsel %vm285_vm5, %v1176_v10, %v1182_v61  ;;  %vm1199_vm5 = vcmask 0  }
 0x5c8   :  { %v1165_v24 = vpop.permute.xlu1 %1164 }
 0x5c9   :  { %v1177_v62 = vperm.slane %v1165_v24, %v1452_v9 }
 0x5cb   :  { %v1184_v44 = vsel %vm287_vm6, %v1177_v62, %v1183_v1 }
 0x5f7   :  { %v1171_v53 = vpop.permute.xlu0 %1170 }
 0x5f8   :  { %v1179_v40 = vperm.slane %v1171_v53, %v1452_v9 }
 0x5ff   :  { %v1168_v54 = vpop.permute.xlu2 %1167 }
 0x600   :  { %v1178_v46 = vperm.slane %v1168_v54, %v1452_v9 }
 0x602   :  { %v1185_v41 = vsel %vm2119_vm3, %v1178_v46, %v1184_v44 }
 0x603   :  { %v1186_v35 = vsel %vm2112_vm2, %v1179_v40, %v1185_v41 }
 0x604   :  { %v1188_v15 = vsel %vm2120_vm0, %v1186_v35, 0.0 }
 0x605   :  { %1189 = vadd.xlane.f32.xlu0 %v1188_v15 }
 0x628   :  { %v876_v6 = vpop.permute.xlu1 %875 }
 0x629   :  { %v879_v0 = vsel %vm878_vm4, %v876_v6, 0.0 }
 0x62a   :  { %880 = vadd.xlane.f32.xlu2 %v879_v0 }
 0x678   :  { %v1190_v4 = vpop.xlane.xlu0 %1189 }
 0x679   :  { %v1191_v26 = vrot.slane %v1190_v4, 4 }
 0x67b   :  { %v1192_v59 = vadd.f32 %v1191_v26, %v1190_v4 }
 0x67d   :  { %v1193_v63 = vrot.slane %v1192_v59, 2 }
 0x67f   :  { %v1194_v31 = vadd.f32 %v1193_v63, %v1192_v59 }
 0x681   :  { %v1195_v9 = vrot.slane %v1194_v31, 1 }
 0x683   :  { %v1196_v14 = vadd.f32 %v1195_v9, %v1194_v31 }
 0x685   :  { %v1197_v55 = vmul.f32 -0.125, %v1196_v14 }
 0x69d   :  { %v881_v51 = vpop.xlane.xlu2 %880 }
 0x69e   :  { %v882_v25 = vrot.slane %v881_v51, 4 }
 0x6a0   :  { %v883_v58 = vadd.f32 %v882_v25, %v881_v51 }
 0x6a2   :  { %v884_v11 = vrot.slane %v883_v58, 2 }
 0x6a4   :  { %v885_v57 = vadd.f32 %v884_v11, %v883_v58 }
 0x6a6   :  { %v886_v16 = vrot.slane %v885_v57, 1 }
 0x6a8   :  { %v887_v29 = vadd.f32 %v886_v16, %v885_v57 }
 0x6aa   :  { %v888_v12 = vmul.f32 0.0052083335, %v887_v29 }
 0x6ac   :  { %v1198_v19 = vadd.f32 %v1197_v55, %v888_v12 }
 0x6ae   :  { %1200 = vst.msk [vmem:[#allocation2] sm:$0x1] %vm1199_vm5, %v1198_v19 }
 0x6af   :  { %1211 = dma.vmem_to_hbm [thread:$0]  %s1207_s29, 16, %s1209_s6, [#allocation3]  }
 0x6b0   :  { %1365 = dma.done.wait [#allocation3], 16  }
 0x6b1   :  { %1366 = vsyncadd [#allocation3], 4294967280 }
 0x6b2   :  { %1220 = vsyncpa [#allocation3], 1 }

</bundles_post_ra>
